<compile_context>
chip_gen: v7x
topology: tpu7x:2x2x1
jax: 0.10.0
libtpu: 0.0.40
codegen_flags: <defaults>
</compile_context>

<pallas_src>
import functools

import jax
import jax.numpy as jnp
from jax import lax
from jax.experimental import pallas as pl
from jax.experimental.pallas import tpu as pltpu

BN_EPS = 1e-5
_LANE = 128


def _round_up(x, m):
    return (x + m - 1) // m * m


# ----------------------------- Pallas kernels -----------------------------

def _conv3x3_stats_kernel(x3_ref, w_ref, y_ref, stats_ref, *, H, W):
    """3x3 conv as 9 shifted matmuls + per-channel sum / sum-of-squares accum.

    x3_ref  : (1, 3, (H+2)*W, Cp) bf16  -- 3 W-shifted copies of the padded input
    w_ref   : (9, Cp, Cp)        bf16  -- resident across the N grid
    y_ref   : (1, H*W, Cp)       f32   -- raw conv output for this sample
    stats_ref: (2, Cp)           f32   -- [sum, sum_sq] accumulated over samples
    """
    @pl.when(pl.program_id(0) == 0)
    def _init():
        stats_ref[...] = jnp.zeros_like(stats_ref)

    acc = None
    for dh in range(3):
        for dw in range(3):
            xs = x3_ref[0, dw, dh * W:dh * W + H * W, :]          # (H*W, Cp) bf16
            d = jnp.dot(xs, w_ref[dh * 3 + dw],
                        preferred_element_type=jnp.float32)
            acc = d if acc is None else acc + d

    y_ref[0] = acc.astype(y_ref.dtype)
    s = jnp.sum(acc, axis=0, keepdims=True)
    sq = jnp.sum(acc * acc, axis=0, keepdims=True)
    stats_ref[...] += jnp.concatenate([s, sq], axis=0)


def _bn_relu_kernel(y_ref, sc_ref, sh_ref, o_ref):
    y = y_ref[...].astype(jnp.float32)
    o_ref[...] = jnp.maximum(y * sc_ref[...] + sh_ref[...], 0.0).astype(o_ref.dtype)


def _bn_add_relu_kernel(y_ref, r_ref, sc_ref, sh_ref, o_ref):
    y = y_ref[...].astype(jnp.float32)
    o_ref[...] = jnp.maximum(
        y * sc_ref[...] + sh_ref[...] + r_ref[...], 0.0).astype(o_ref.dtype)


# --------------------------- pallas_call wrappers ---------------------------

def _conv3x3_stats(x3, wgt, n, h, w, cp):
    kernel = functools.partial(_conv3x3_stats_kernel, H=h, W=w)
    return pl.pallas_call(
        kernel,
        out_shape=(jax.ShapeDtypeStruct((n, h * w, cp), jnp.float32),
                   jax.ShapeDtypeStruct((2, cp), jnp.float32)),
        grid_spec=pltpu.PrefetchScalarGridSpec(
            num_scalar_prefetch=0,
            grid=(n,),
            in_specs=[
                pl.BlockSpec((1, 3, (h + 2) * w, cp), lambda i: (i, 0, 0, 0)),
                pl.BlockSpec((9, cp, cp), lambda i: (0, 0, 0)),   # resident weights
            ],
            out_specs=(
                pl.BlockSpec((1, h * w, cp), lambda i: (i, 0, 0)),
                pl.BlockSpec((2, cp), lambda i: (0, 0)),          # resident accumulator
            )),
        compiler_params=pltpu.CompilerParams(
            dimension_semantics=("arbitrary",)),
    )(x3, wgt)


def _bn_relu(y, sc, sh, tile_m, out_dtype):
    m, cp = y.shape
    return pl.pallas_call(
        _bn_relu_kernel,
        out_shape=jax.ShapeDtypeStruct((m, cp), out_dtype),
        grid_spec=pltpu.PrefetchScalarGridSpec(
            num_scalar_prefetch=0,
            grid=(pl.cdiv(m, tile_m),),
            in_specs=[pl.BlockSpec((tile_m, cp), lambda i: (i, 0)),
                      pl.BlockSpec((1, cp), lambda i: (0, 0)),
                      pl.BlockSpec((1, cp), lambda i: (0, 0))],
            out_specs=pl.BlockSpec((tile_m, cp), lambda i: (i, 0))),
        compiler_params=pltpu.CompilerParams(
            dimension_semantics=("parallel",)),
    )(y, sc, sh)


def _bn_add_relu(y, r, sc, sh, tile_m, out_dtype):
    m, cp = y.shape
    return pl.pallas_call(
        _bn_add_relu_kernel,
        out_shape=jax.ShapeDtypeStruct((m, cp), out_dtype),
        grid_spec=pltpu.PrefetchScalarGridSpec(
            num_scalar_prefetch=0,
            grid=(pl.cdiv(m, tile_m),),
            in_specs=[pl.BlockSpec((tile_m, cp), lambda i: (i, 0)),
                      pl.BlockSpec((tile_m, cp), lambda i: (i, 0)),
                      pl.BlockSpec((1, cp), lambda i: (0, 0)),
                      pl.BlockSpec((1, cp), lambda i: (0, 0))],
            out_specs=pl.BlockSpec((tile_m, cp), lambda i: (i, 0))),
        compiler_params=pltpu.CompilerParams(
            dimension_semantics=("parallel",)),
    )(y, r, sc, sh)


# ------------------------------ plain-JAX glue ------------------------------

def _shift3(x_nhwc):
    """(N,H,W,C) -> (N, 3, (H+2)*W, C): 3 W-shifted copies of the spatially
    padded activation. Each 3x3 tap then maps to a contiguous row window."""
    n, h, w, c = x_nhwc.shape
    xp = jnp.pad(x_nhwc, ((0, 0), (1, 1), (1, 1), (0, 0)))
    cols = jnp.stack([xp[:, :, dw:dw + w, :] for dw in range(3)], axis=1)
    return cols.reshape(n, 3, (h + 2) * w, c)


def _prep_weight(wgt, cp):
    kh, kw, cin, cout = wgt.shape
    w_p = jnp.zeros((kh, kw, cp, cp), jnp.float32)
    w_p = w_p.at[:, :, :cin, :cout].set(wgt.astype(jnp.float32))
    return w_p.reshape(kh * kw, cp, cp).astype(jnp.bfloat16)


def _pad_vec(v, cp):
    return jnp.pad(v.astype(jnp.float32), (0, cp - v.shape[0]))


def _bn_scale_shift(stats, count, gamma_p, beta_p):
    mean = stats[0] / count
    var = jnp.maximum(stats[1] / count - mean * mean, 0.0)   # biased variance
    scale = gamma_p * lax.rsqrt(var + BN_EPS)                 # 0 on padded channels
    shift = beta_p - mean * scale
    return scale.reshape(1, -1), shift.reshape(1, -1)


@jax.jit
def residual_block(x_nchw, params):
    # TODO(synk): stride>1 and an arbitrary `downsample` nn.Module are not
    # implemented; this covers the default stride=1 / identity-residual config.
    w1, cb1, g1, b1, w2, cb2, g2, b2 = params
    del cb1, cb2  # conv bias cancels exactly under training-mode BatchNorm

    x = jnp.transpose(x_nchw, (0, 2, 3, 1)).astype(jnp.float32)   # NCHW -> NHWC
    n, h, w, cin = x.shape
    cout = w1.shape[-1]
    assert cin == cout and w % 8 == 0, \
        "identity residual requires cin==cout; W should be 8-aligned"

    cp = _round_up(cout, _LANE)            # lane-dense channel dimension
    m = n * h * w
    tile_m = min(256, m)

    x_p = jnp.pad(x, ((0, 0), (0, 0), (0, 0), (0, cp - cin)))      # (N,H,W,Cp) f32
    x_bf = x_p.astype(jnp.bfloat16)

    w1_p, w2_p = _prep_weight(w1, cp), _prep_weight(w2, cp)
    g1_p, b1_p = _pad_vec(g1, cp), _pad_vec(b1, cp)
    g2_p, b2_p = _pad_vec(g2, cp), _pad_vec(b2, cp)

    # ---- stage 1: conv1 (+ global BN stats), then BN1 + ReLU ----
    y1, st1 = _conv3x3_stats(_shift3(x_bf), w1_p, n, h, w, cp)
    sc1, sh1 = _bn_scale_shift(st1, m, g1_p, b1_p)
    act1 = _bn_relu(y1.reshape(m, cp), sc1, sh1, tile_m, jnp.bfloat16)

    # ---- stage 2: conv2 (+ global BN stats), then BN2 + residual + ReLU ----
    y2, st2 = _conv3x3_stats(_shift3(act1.reshape(n, h, w, cp)), w2_p, n, h, w, cp)
    sc2, sh2 = _bn_scale_shift(st2, m, g2_p, b2_p)
    out = _bn_add_relu(y2.reshape(m, cp), x_p.reshape(m, cp),
                       sc2, sh2, tile_m, jnp.float32)

    out = out.reshape(n, h, w, cp)[..., :cout]
    return jnp.transpose(out, (0, 3, 1, 2))                        # NHWC -> NCHW


# ------------------------------- reference ---------------------------------

def _reference(x_nchw, params):
    """Pure-JAX f32 reference of the PyTorch forward (training-mode BN)."""
    w1, cb1, g1, b1, w2, cb2, g2, b2 = params
    x = jnp.transpose(x_nchw, (0, 2, 3, 1)).astype(jnp.float32)

    def conv(a, wgt, cb):
        y = lax.conv_general_dilated(
            a, wgt, (1, 1), "SAME",
            dimension_numbers=("NHWC", "HWIO", "NHWC"))
        return y + cb

    def bn(a, g, b):
        mu = jnp.mean(a, axis=(0, 1, 2), keepdims=True)
        var = jnp.mean((a - mu) ** 2, axis=(0, 1, 2), keepdims=True)
        return (a - mu) * lax.rsqrt(var + BN_EPS) * g + b

    y = jnp.maximum(bn(conv(x, w1, cb1), g1, b1), 0.0)
    y = bn(conv(y, w2, cb2), g2, b2) + x
    y = jnp.maximum(y, 0.0)
    return jnp.transpose(y, (0, 3, 1, 2))


if __name__ == "__main__":
    N, CIN, COUT, H, W = 2, 4, 4, 16, 16
    keys = jax.random.split(jax.random.PRNGKey(0), 9)

    x = jax.random.normal(keys[0], (N, CIN, H, W), jnp.float32)    # NCHW, like PyTorch

    w1 = 0.1 * jax.random.normal(keys[1], (3, 3, CIN, COUT), jnp.float32)   # HWIO
    cb1 = 0.1 * jax.random.normal(keys[2], (COUT,), jnp.float32)
    g1 = 1.0 + 0.1 * jax.random.normal(keys[3], (COUT,), jnp.float32)
    b1 = 0.1 * jax.random.normal(keys[4], (COUT,), jnp.float32)

    w2 = 0.1 * jax.random.normal(keys[5], (3, 3, COUT, COUT), jnp.float32)  # HWIO
    cb2 = 0.1 * jax.random.normal(keys[6], (COUT,), jnp.float32)
    g2 = 1.0 + 0.1 * jax.random.normal(keys[7], (COUT,), jnp.float32)
    b2 = 0.1 * jax.random.normal(keys[8], (COUT,), jnp.float32)

    params = (w1, cb1, g1, b1, w2, cb2, g2, b2)

    out = jax.block_until_ready(residual_block(x, params))
    ref = jax.block_until_ready(_reference(x, params))

    assert out.shape == (N, COUT, H, W), out.shape
    max_err = float(jnp.max(jnp.abs(out - ref)))
    # bf16 matmul operands with f32 accumulation / f32 BN math -> small deviation
    assert max_err < 5e-2, f"mismatch vs reference, max abs err = {max_err}"
    print("KERNEL_OK")
</pallas_src>

<mosaic_0001>
module attributes {stable_mosaic.version = 11 : i64} {
  func.func @_conv3x3_stats_kernel(%arg0: i32, %arg1: memref<1x3x288x128xbf16, #tpu.memory_space<vmem>>, %arg2: memref<9x128x128xbf16, #tpu.memory_space<vmem>>, %arg3: memref<1x256x128xf32, #tpu.memory_space<vmem>>, %arg4: memref<2x128xf32, #tpu.memory_space<vmem>>) attributes {dimension_semantics = [#tpu.dimension_semantics<arbitrary>], iteration_bounds = array<i64: 2>, scalar_prefetch = 0 : i64, scratch_operands = 0 : i64, tpu.core_type = #tpu.core_type<tc>, window_params = [{transform_indices = @transform_0, window_bounds = array<i64: 1, 3, 288, 128>}, {pipeline_mode = #tpu.pipeline_mode<synchronous>, transform_indices = @transform_1, window_bounds = array<i64: 9, 128, 128>}, {transform_indices = @transform_2, window_bounds = array<i64: 1, 256, 128>}, {pipeline_mode = #tpu.pipeline_mode<synchronous>, transform_indices = @transform_3, window_bounds = array<i64: 2, 128>}]} {
    %c0_i32 = arith.constant 0 : i32
    %0 = arith.cmpi eq, %arg0, %c0_i32 : i32
    %1 = arith.extui %0 : i1 to i32
    %c0_i32_0 = arith.constant 0 : i32
    %2 = arith.cmpi ne, %1, %c0_i32_0 : i32
    scf.if %2 {
      %cst_70 = arith.constant 0.000000e+00 : f32
      %68 = vector.broadcast %cst_70 : f32 to vector<2x128xf32>
      %c0_71 = arith.constant 0 : index
      %c0_72 = arith.constant 0 : index
      %69 = vector.load %arg4[%c0_71, %c0_72] : memref<2x128xf32, #tpu.memory_space<vmem>>, vector<2x128xf32>
      tpu.vector_store %arg4[%c0_71, %c0_72], %68 {strides = array<i32>} : memref<2x128xf32, #tpu.memory_space<vmem>>, vector<2x128xf32>,
    } else {
    }
    %c0 = arith.constant 0 : index
    %c0_1 = arith.constant 0 : index
    %c0_2 = arith.constant 0 : index
    %c0_3 = arith.constant 0 : index
    %3 = vector.load %arg1[%c0, %c0_1, %c0_2, %c0_3] : memref<1x3x288x128xbf16, #tpu.memory_space<vmem>>, vector<1x1x256x128xbf16>
    %4 = vector.shape_cast %3 : vector<1x1x256x128xbf16> to vector<256x128xbf16>
    %c0_4 = arith.constant 0 : index
    %c0_5 = arith.constant 0 : index
    %c0_6 = arith.constant 0 : index
    %5 = vector.load %arg2[%c0_4, %c0_5, %c0_6] : memref<9x128x128xbf16, #tpu.memory_space<vmem>>, vector<1x128x128xbf16>
    %6 = vector.shape_cast %5 : vector<1x128x128xbf16> to vector<128x128xbf16>
    %cst = arith.constant dense<0.000000e+00> : vector<256x128xf32>
    %7 = tpu.matmul %4, %6, %cst {dimension_numbers = #tpu.dot_dimension_numbers<[1], [0], [0], [1], [0, 0, 1, 1], [], []>} : vector<256x128xbf16>, vector<128x128xbf16>, vector<256x128xf32> -> vector<256x128xf32>
    %c0_7 = arith.constant 0 : index
    %c1 = arith.constant 1 : index
    %c0_8 = arith.constant 0 : index
    %c0_9 = arith.constant 0 : index
    %8 = vector.load %arg1[%c0_7, %c1, %c0_8, %c0_9] : memref<1x3x288x128xbf16, #tpu.memory_space<vmem>>, vector<1x1x256x128xbf16>
    %9 = vector.shape_cast %8 : vector<1x1x256x128xbf16> to vector<256x128xbf16>
    %c1_10 = arith.constant 1 : index
    %c0_11 = arith.constant 0 : index
    %c0_12 = arith.constant 0 : index
    %10 = vector.load %arg2[%c1_10, %c0_11, %c0_12] : memref<9x128x128xbf16, #tpu.memory_space<vmem>>, vector<1x128x128xbf16>
    %11 = vector.shape_cast %10 : vector<1x128x128xbf16> to vector<128x128xbf16>
    %cst_13 = arith.constant dense<0.000000e+00> : vector<256x128xf32>
    %12 = tpu.matmul %9, %11, %cst_13 {dimension_numbers = #tpu.dot_dimension_numbers<[1], [0], [0], [1], [0, 0, 1, 1], [], []>} : vector<256x128xbf16>, vector<128x128xbf16>, vector<256x128xf32> -> vector<256x128xf32>
    %13 = arith.addf %7, %12 : vector<256x128xf32>
    %c0_14 = arith.constant 0 : index
    %c2 = arith.constant 2 : index
    %c0_15 = arith.constant 0 : index
    %c0_16 = arith.constant 0 : index
    %14 = vector.load %arg1[%c0_14, %c2, %c0_15, %c0_16] : memref<1x3x288x128xbf16, #tpu.memory_space<vmem>>, vector<1x1x256x128xbf16>
    %15 = vector.shape_cast %14 : vector<1x1x256x128xbf16> to vector<256x128xbf16>
    %c2_17 = arith.constant 2 : index
    %c0_18 = arith.constant 0 : index
    %c0_19 = arith.constant 0 : index
    %16 = vector.load %arg2[%c2_17, %c0_18, %c0_19] : memref<9x128x128xbf16, #tpu.memory_space<vmem>>, vector<1x128x128xbf16>
    %17 = vector.shape_cast %16 : vector<1x128x128xbf16> to vector<128x128xbf16>
    %cst_20 = arith.constant dense<0.000000e+00> : vector<256x128xf32>
    %18 = tpu.matmul %15, %17, %cst_20 {dimension_numbers = #tpu.dot_dimension_numbers<[1], [0], [0], [1], [0, 0, 1, 1], [], []>} : vector<256x128xbf16>, vector<128x128xbf16>, vector<256x128xf32> -> vector<256x128xf32>
    %19 = arith.addf %13, %18 : vector<256x128xf32>
    %c0_21 = arith.constant 0 : index
    %c0_22 = arith.constant 0 : index
    %c16 = arith.constant 16 : index
    %c0_23 = arith.constant 0 : index
    %20 = vector.load %arg1[%c0_21, %c0_22, %c16, %c0_23] : memref<1x3x288x128xbf16, #tpu.memory_space<vmem>>, vector<1x1x256x128xbf16>
    %21 = vector.shape_cast %20 : vector<1x1x256x128xbf16> to vector<256x128xbf16>
    %c3 = arith.constant 3 : index
    %c0_24 = arith.constant 0 : index
    %c0_25 = arith.constant 0 : index
    %22 = vector.load %arg2[%c3, %c0_24, %c0_25] : memref<9x128x128xbf16, #tpu.memory_space<vmem>>, vector<1x128x128xbf16>
    %23 = vector.shape_cast %22 : vector<1x128x128xbf16> to vector<128x128xbf16>
    %cst_26 = arith.constant dense<0.000000e+00> : vector<256x128xf32>
    %24 = tpu.matmul %21, %23, %cst_26 {dimension_numbers = #tpu.dot_dimension_numbers<[1], [0], [0], [1], [0, 0, 1, 1], [], []>} : vector<256x128xbf16>, vector<128x128xbf16>, vector<256x128xf32> -> vector<256x128xf32>
    %25 = arith.addf %19, %24 : vector<256x128xf32>
    %c0_27 = arith.constant 0 : index
    %c1_28 = arith.constant 1 : index
    %c16_29 = arith.constant 16 : index
    %c0_30 = arith.constant 0 : index
    %26 = vector.load %arg1[%c0_27, %c1_28, %c16_29, %c0_30] : memref<1x3x288x128xbf16, #tpu.memory_space<vmem>>, vector<1x1x256x128xbf16>
    %27 = vector.shape_cast %26 : vector<1x1x256x128xbf16> to vector<256x128xbf16>
    %c4 = arith.constant 4 : index
    %c0_31 = arith.constant 0 : index
    %c0_32 = arith.constant 0 : index
    %28 = vector.load %arg2[%c4, %c0_31, %c0_32] : memref<9x128x128xbf16, #tpu.memory_space<vmem>>, vector<1x128x128xbf16>
    %29 = vector.shape_cast %28 : vector<1x128x128xbf16> to vector<128x128xbf16>
    %cst_33 = arith.constant dense<0.000000e+00> : vector<256x128xf32>
    %30 = tpu.matmul %27, %29, %cst_33 {dimension_numbers = #tpu.dot_dimension_numbers<[1], [0], [0], [1], [0, 0, 1, 1], [], []>} : vector<256x128xbf16>, vector<128x128xbf16>, vector<256x128xf32> -> vector<256x128xf32>
    %31 = arith.addf %25, %30 : vector<256x128xf32>
    %c0_34 = arith.constant 0 : index
    %c2_35 = arith.constant 2 : index
    %c16_36 = arith.constant 16 : index
    %c0_37 = arith.constant 0 : index
    %32 = vector.load %arg1[%c0_34, %c2_35, %c16_36, %c0_37] : memref<1x3x288x128xbf16, #tpu.memory_space<vmem>>, vector<1x1x256x128xbf16>
    %33 = vector.shape_cast %32 : vector<1x1x256x128xbf16> to vector<256x128xbf16>
    %c5 = arith.constant 5 : index
    %c0_38 = arith.constant 0 : index
    %c0_39 = arith.constant 0 : index
    %34 = vector.load %arg2[%c5, %c0_38, %c0_39] : memref<9x128x128xbf16, #tpu.memory_space<vmem>>, vector<1x128x128xbf16>
    %35 = vector.shape_cast %34 : vector<1x128x128xbf16> to vector<128x128xbf16>
    %cst_40 = arith.constant dense<0.000000e+00> : vector<256x128xf32>
    %36 = tpu.matmul %33, %35, %cst_40 {dimension_numbers = #tpu.dot_dimension_numbers<[1], [0], [0], [1], [0, 0, 1, 1], [], []>} : vector<256x128xbf16>, vector<128x128xbf16>, vector<256x128xf32> -> vector<256x128xf32>
    %37 = arith.addf %31, %36 : vector<256x128xf32>
    %c0_41 = arith.constant 0 : index
    %c0_42 = arith.constant 0 : index
    %c32 = arith.constant 32 : index
    %c0_43 = arith.constant 0 : index
    %38 = vector.load %arg1[%c0_41, %c0_42, %c32, %c0_43] : memref<1x3x288x128xbf16, #tpu.memory_space<vmem>>, vector<1x1x256x128xbf16>
    %39 = vector.shape_cast %38 : vector<1x1x256x128xbf16> to vector<256x128xbf16>
    %c6 = arith.constant 6 : index
    %c0_44 = arith.constant 0 : index
    %c0_45 = arith.constant 0 : index
    %40 = vector.load %arg2[%c6, %c0_44, %c0_45] : memref<9x128x128xbf16, #tpu.memory_space<vmem>>, vector<1x128x128xbf16>
    %41 = vector.shape_cast %40 : vector<1x128x128xbf16> to vector<128x128xbf16>
    %cst_46 = arith.constant dense<0.000000e+00> : vector<256x128xf32>
    %42 = tpu.matmul %39, %41, %cst_46 {dimension_numbers = #tpu.dot_dimension_numbers<[1], [0], [0], [1], [0, 0, 1, 1], [], []>} : vector<256x128xbf16>, vector<128x128xbf16>, vector<256x128xf32> -> vector<256x128xf32>
    %43 = arith.addf %37, %42 : vector<256x128xf32>
    %c0_47 = arith.constant 0 : index
    %c1_48 = arith.constant 1 : index
    %c32_49 = arith.constant 32 : index
    %c0_50 = arith.constant 0 : index
    %44 = vector.load %arg1[%c0_47, %c1_48, %c32_49, %c0_50] : memref<1x3x288x128xbf16, #tpu.memory_space<vmem>>, vector<1x1x256x128xbf16>
    %45 = vector.shape_cast %44 : vector<1x1x256x128xbf16> to vector<256x128xbf16>
    %c7 = arith.constant 7 : index
    %c0_51 = arith.constant 0 : index
    %c0_52 = arith.constant 0 : index
    %46 = vector.load %arg2[%c7, %c0_51, %c0_52] : memref<9x128x128xbf16, #tpu.memory_space<vmem>>, vector<1x128x128xbf16>
    %47 = vector.shape_cast %46 : vector<1x128x128xbf16> to vector<128x128xbf16>
    %cst_53 = arith.constant dense<0.000000e+00> : vector<256x128xf32>
    %48 = tpu.matmul %45, %47, %cst_53 {dimension_numbers = #tpu.dot_dimension_numbers<[1], [0], [0], [1], [0, 0, 1, 1], [], []>} : vector<256x128xbf16>, vector<128x128xbf16>, vector<256x128xf32> -> vector<256x128xf32>
    %49 = arith.addf %43, %48 : vector<256x128xf32>
    %c0_54 = arith.constant 0 : index
    %c2_55 = arith.constant 2 : index
    %c32_56 = arith.constant 32 : index
    %c0_57 = arith.constant 0 : index
    %50 = vector.load %arg1[%c0_54, %c2_55, %c32_56, %c0_57] : memref<1x3x288x128xbf16, #tpu.memory_space<vmem>>, vector<1x1x256x128xbf16>
    %51 = vector.shape_cast %50 : vector<1x1x256x128xbf16> to vector<256x128xbf16>
    %c8 = arith.constant 8 : index
    %c0_58 = arith.constant 0 : index
    %c0_59 = arith.constant 0 : index
    %52 = vector.load %arg2[%c8, %c0_58, %c0_59] : memref<9x128x128xbf16, #tpu.memory_space<vmem>>, vector<1x128x128xbf16>
    %53 = vector.shape_cast %52 : vector<1x128x128xbf16> to vector<128x128xbf16>
    %cst_60 = arith.constant dense<0.000000e+00> : vector<256x128xf32>
    %54 = tpu.matmul %51, %53, %cst_60 {dimension_numbers = #tpu.dot_dimension_numbers<[1], [0], [0], [1], [0, 0, 1, 1], [], []>} : vector<256x128xbf16>, vector<128x128xbf16>, vector<256x128xf32> -> vector<256x128xf32>
    %55 = arith.addf %49, %54 : vector<256x128xf32>
    %c0_61 = arith.constant 0 : index
    %c0_62 = arith.constant 0 : index
    %c0_63 = arith.constant 0 : index
    %56 = vector.load %arg3[%c0_61, %c0_62, %c0_63] : memref<1x256x128xf32, #tpu.memory_space<vmem>>, vector<1x256x128xf32>
    %57 = vector.shape_cast %56 : vector<1x256x128xf32> to vector<256x128xf32>
    %58 = vector.shape_cast %55 : vector<256x128xf32> to vector<1x256x128xf32>
    tpu.vector_store %arg3[%c0_61, %c0_62, %c0_63], %58 {strides = array<i32>} : memref<1x256x128xf32, #tpu.memory_space<vmem>>, vector<1x256x128xf32>,
    %cst_64 = arith.constant dense<0.000000e+00> : vector<128xf32>
    %59 = vector.multi_reduction <add>, %55, %cst_64 [0] : vector<256x128xf32> to vector<128xf32>
    %60 = vector.shape_cast %59 : vector<128xf32> to vector<1x128xf32>
    %61 = arith.mulf %55, %55 : vector<256x128xf32>
    %cst_65 = arith.constant dense<0.000000e+00> : vector<128xf32>
    %62 = vector.multi_reduction <add>, %61, %cst_65 [0] : vector<256x128xf32> to vector<128xf32>
    %63 = vector.shape_cast %62 : vector<128xf32> to vector<1x128xf32>
    %c0_66 = arith.constant 0 : index
    %c0_67 = arith.constant 0 : index
    %64 = vector.load %arg4[%c0_66, %c0_67] : memref<2x128xf32, #tpu.memory_space<vmem>>, vector<2x128xf32>
    %65 = tpu.concatenate %60, %63 in 0 : vector<1x128xf32>, vector<1x128xf32> -> vector<2x128xf32>
    %66 = arith.addf %64, %65 : vector<2x128xf32>
    %c0_68 = arith.constant 0 : index
    %c0_69 = arith.constant 0 : index
    %67 = vector.load %arg4[%c0_68, %c0_69] : memref<2x128xf32, #tpu.memory_space<vmem>>, vector<2x128xf32>
    tpu.vector_store %arg4[%c0_68, %c0_69], %66 {strides = array<i32>} : memref<2x128xf32, #tpu.memory_space<vmem>>, vector<2x128xf32>,
    return
  }
  func.func @transform_0(%arg0: i32) -> (i32, i32, i32, i32) {
    %c0_i32 = arith.constant 0 : i32
    %c0_i32_0 = arith.constant 0 : i32
    %c0_i32_1 = arith.constant 0 : i32
    %c0_i32_2 = arith.constant 0 : i32
    return %arg0, %c0_i32, %c0_i32_0, %c0_i32_1 : i32, i32, i32, i32
  }
  func.func @transform_1(%arg0: i32) -> (i32, i32, i32) {
    %c0_i32 = arith.constant 0 : i32
    %c0_i32_0 = arith.constant 0 : i32
    %c0_i32_1 = arith.constant 0 : i32
    %c0_i32_2 = arith.constant 0 : i32
    return %c0_i32, %c0_i32_0, %c0_i32_1 : i32, i32, i32
  }
  func.func @transform_2(%arg0: i32) -> (i32, i32, i32) {
    %c0_i32 = arith.constant 0 : i32
    %c0_i32_0 = arith.constant 0 : i32
    %c0_i32_1 = arith.constant 0 : i32
    return %arg0, %c0_i32, %c0_i32_0 : i32, i32, i32
  }
  func.func @transform_3(%arg0: i32) -> (i32, i32) {
    %c0_i32 = arith.constant 0 : i32
    %c0_i32_0 = arith.constant 0 : i32
    %c0_i32_1 = arith.constant 0 : i32
    return %c0_i32, %c0_i32_0 : i32, i32
  }
}

module attributes {stable_mosaic.version = 11 : i64} {
  func.func @_bn_relu_kernel(%arg0: i32, %arg1: memref<256x128xf32, #tpu.memory_space<vmem>>, %arg2: memref<1x128xf32, #tpu.memory_space<vmem>>, %arg3: memref<1x128xf32, #tpu.memory_space<vmem>>, %arg4: memref<256x128xbf16, #tpu.memory_space<vmem>>) attributes {dimension_semantics = [#tpu.dimension_semantics<parallel>], iteration_bounds = array<i64: 2>, scalar_prefetch = 0 : i64, scratch_operands = 0 : i64, tpu.core_type = #tpu.core_type<tc>, window_params = [{transform_indices = @transform_0, window_bounds = array<i64: 256, 128>}, {pipeline_mode = #tpu.pipeline_mode<synchronous>, transform_indices = @transform_1, window_bounds = array<i64: 1, 128>}, {pipeline_mode = #tpu.pipeline_mode<synchronous>, transform_indices = @transform_2, window_bounds = array<i64: 1, 128>}, {transform_indices = @transform_3, window_bounds = array<i64: 256, 128>}]} {
    %c0 = arith.constant 0 : index
    %c0_0 = arith.constant 0 : index
    %0 = vector.load %arg1[%c0, %c0_0] : memref<256x128xf32, #tpu.memory_space<vmem>>, vector<256x128xf32>
    %c0_1 = arith.constant 0 : index
    %c0_2 = arith.constant 0 : index
    %1 = vector.load %arg2[%c0_1, %c0_2] : memref<1x128xf32, #tpu.memory_space<vmem>>, vector<1x128xf32>
    %2 = vector.broadcast %1 : vector<1x128xf32> to vector<256x128xf32>
    %3 = arith.mulf %0, %2 : vector<256x128xf32>
    %c0_3 = arith.constant 0 : index
    %c0_4 = arith.constant 0 : index
    %4 = vector.load %arg3[%c0_3, %c0_4] : memref<1x128xf32, #tpu.memory_space<vmem>>, vector<1x128xf32>
    %5 = vector.broadcast %4 : vector<1x128xf32> to vector<256x128xf32>
    %6 = arith.addf %3, %5 : vector<256x128xf32>
    %cst = arith.constant 0.000000e+00 : f32
    %7 = vector.broadcast %cst : f32 to vector<256x128xf32>
    %8 = arith.maximumf %6, %7 : vector<256x128xf32>
    %9 = arith.truncf %8 : vector<256x128xf32> to vector<256x128xbf16>
    %c0_5 = arith.constant 0 : index
    %c0_6 = arith.constant 0 : index
    %10 = vector.load %arg4[%c0_5, %c0_6] : memref<256x128xbf16, #tpu.memory_space<vmem>>, vector<256x128xbf16>
    tpu.vector_store %arg4[%c0_5, %c0_6], %9 {strides = array<i32>} : memref<256x128xbf16, #tpu.memory_space<vmem>>, vector<256x128xbf16>,
    return
  }
  func.func @transform_0(%arg0: i32) -> (i32, i32) {
    %c0_i32 = arith.constant 0 : i32
    %c0_i32_0 = arith.constant 0 : i32
    return %arg0, %c0_i32 : i32, i32
  }
  func.func @transform_1(%arg0: i32) -> (i32, i32) {
    %c0_i32 = arith.constant 0 : i32
    %c0_i32_0 = arith.constant 0 : i32
    %c0_i32_1 = arith.constant 0 : i32
    return %c0_i32, %c0_i32_0 : i32, i32
  }
  func.func @transform_2(%arg0: i32) -> (i32, i32) {
    %c0_i32 = arith.constant 0 : i32
    %c0_i32_0 = arith.constant 0 : i32
    %c0_i32_1 = arith.constant 0 : i32
    return %c0_i32, %c0_i32_0 : i32, i32
  }
  func.func @transform_3(%arg0: i32) -> (i32, i32) {
    %c0_i32 = arith.constant 0 : i32
    %c0_i32_0 = arith.constant 0 : i32
    return %arg0, %c0_i32 : i32, i32
  }
}

module attributes {stable_mosaic.version = 11 : i64} {
  func.func @_bn_add_relu_kernel(%arg0: i32, %arg1: memref<256x128xf32, #tpu.memory_space<vmem>>, %arg2: memref<256x128xf32, #tpu.memory_space<vmem>>, %arg3: memref<1x128xf32, #tpu.memory_space<vmem>>, %arg4: memref<1x128xf32, #tpu.memory_space<vmem>>, %arg5: memref<256x128xf32, #tpu.memory_space<vmem>>) attributes {dimension_semantics = [#tpu.dimension_semantics<parallel>], iteration_bounds = array<i64: 2>, scalar_prefetch = 0 : i64, scratch_operands = 0 : i64, tpu.core_type = #tpu.core_type<tc>, window_params = [{transform_indices = @transform_0, window_bounds = array<i64: 256, 128>}, {transform_indices = @transform_1, window_bounds = array<i64: 256, 128>}, {pipeline_mode = #tpu.pipeline_mode<synchronous>, transform_indices = @transform_2, window_bounds = array<i64: 1, 128>}, {pipeline_mode = #tpu.pipeline_mode<synchronous>, transform_indices = @transform_3, window_bounds = array<i64: 1, 128>}, {transform_indices = @transform_4, window_bounds = array<i64: 256, 128>}]} {
    %c0 = arith.constant 0 : index
    %c0_0 = arith.constant 0 : index
    %0 = vector.load %arg1[%c0, %c0_0] : memref<256x128xf32, #tpu.memory_space<vmem>>, vector<256x128xf32>
    %c0_1 = arith.constant 0 : index
    %c0_2 = arith.constant 0 : index
    %1 = vector.load %arg3[%c0_1, %c0_2] : memref<1x128xf32, #tpu.memory_space<vmem>>, vector<1x128xf32>
    %2 = vector.broadcast %1 : vector<1x128xf32> to vector<256x128xf32>
    %3 = arith.mulf %0, %2 : vector<256x128xf32>
    %c0_3 = arith.constant 0 : index
    %c0_4 = arith.constant 0 : index
    %4 = vector.load %arg4[%c0_3, %c0_4] : memref<1x128xf32, #tpu.memory_space<vmem>>, vector<1x128xf32>
    %5 = vector.broadcast %4 : vector<1x128xf32> to vector<256x128xf32>
    %6 = arith.addf %3, %5 : vector<256x128xf32>
    %c0_5 = arith.constant 0 : index
    %c0_6 = arith.constant 0 : index
    %7 = vector.load %arg2[%c0_5, %c0_6] : memref<256x128xf32, #tpu.memory_space<vmem>>, vector<256x128xf32>
    %8 = arith.addf %6, %7 : vector<256x128xf32>
    %cst = arith.constant 0.000000e+00 : f32
    %9 = vector.broadcast %cst : f32 to vector<256x128xf32>
    %10 = arith.maximumf %8, %9 : vector<256x128xf32>
    %c0_7 = arith.constant 0 : index
    %c0_8 = arith.constant 0 : index
    %11 = vector.load %arg5[%c0_7, %c0_8] : memref<256x128xf32, #tpu.memory_space<vmem>>, vector<256x128xf32>
    tpu.vector_store %arg5[%c0_7, %c0_8], %10 {strides = array<i32>} : memref<256x128xf32, #tpu.memory_space<vmem>>, vector<256x128xf32>,
    return
  }
  func.func @transform_0(%arg0: i32) -> (i32, i32) {
    %c0_i32 = arith.constant 0 : i32
    %c0_i32_0 = arith.constant 0 : i32
    return %arg0, %c0_i32 : i32, i32
  }
  func.func @transform_1(%arg0: i32) -> (i32, i32) {
    %c0_i32 = arith.constant 0 : i32
    %c0_i32_0 = arith.constant 0 : i32
    return %arg0, %c0_i32 : i32, i32
  }
  func.func @transform_2(%arg0: i32) -> (i32, i32) {
    %c0_i32 = arith.constant 0 : i32
    %c0_i32_0 = arith.constant 0 : i32
    %c0_i32_1 = arith.constant 0 : i32
    return %c0_i32, %c0_i32_0 : i32, i32
  }
  func.func @transform_3(%arg0: i32) -> (i32, i32) {
    %c0_i32 = arith.constant 0 : i32
    %c0_i32_0 = arith.constant 0 : i32
    %c0_i32_1 = arith.constant 0 : i32
    return %c0_i32, %c0_i32_0 : i32, i32
  }
  func.func @transform_4(%arg0: i32) -> (i32, i32) {
    %c0_i32 = arith.constant 0 : i32
    %c0_i32_0 = arith.constant 0 : i32
    return %arg0, %c0_i32 : i32, i32
  }
}

</mosaic_0001>

<bundles_post_ra>
// kernel: residual_block.5
= control target key start
LH: loop header
LB: loop body
LE: loop exit
PB: predicated region body
PF: predicated region fallthrough
CT: control target
= control target key end

     0   :  { %s740_s12 = smov 0   ;;  %s887_s0 = inlined_call_operand.vmem [shape: f32[512,128], index: 0, kind: input, shape index: {}]   ;;  %s888_s1 = inlined_call_operand.vmem [shape: f32[1,128], index: 1, kind: input, shape index: {}]   ;;  %s889_s2 = inlined_call_operand.vmem [shape: f32[1,128], index: 2, kind: input, shape index: {}]   ;;  %s890_s3 = inlined_call_operand.vmem [shape: bf16[512,128], index: 3, kind: output, shape index: {}]  }
   0x1 LB: > { %s532_s13 = sadd.s32 4294967295, %s718_s12   ;;  %p536_p0 = scmp.ge.s32.totalorder %s718_s12, 1  ;;  %s718_s12 = sphi %s740_s12, %s13_s12  }
   0x2   : > { %p138_p1 = scmp.lt.s32.totalorder %s718_s12, 3 }
   0x4   : > { %p139_p2 = pnand %p536_p0, %p138_p1 }
   0x5   : > { %s537_s14 = sshll.u32 (!%p139_p2), %s532_s13, 5  ;;  %v754_v0 = vld [vmem:[%s888_s1] ss:$0 sm:$0xff] (!%p139_p2) }
   0x6   : > { %142 = sbr.rel (%p139_p2) target bundleno = 51 (0x33), region = 32  ;;  %p163_p3 = scmp.lt.s32.totalorder (!%p139_p2), %s537_s14, 63  ;;  %v764_v1 = vld [vmem:[%s889_s2] ss:$0 sm:$0xff] (!%p139_p2) }
   0xd   : > { %s892_s14 = smov (!%p163_p3, %s537_s14), 63 }
   0xe   : > { %s538_s15 = sshll.u32 %s892_s14, 3  ;;  %s540_s23 = sshll.u32 %s892_s14, 2 }
   0xf   : > { %s759_s20 = scalar_lea.vmem %s887_s0, %s538_s15  ;;  %s796_s26 = scalar_lea.vmem %s890_s3, %s540_s23 }
  0x10   : > { %v174_v2 = vld [vmem:[%s759_s20] sm:$0xff]  ;;  %v175_v3 = vld [vmem:[%s759_s20 + $0x8] sm:$0xff]  ;;  %v176_v4 = vld [vmem:[%s759_s20 + $0x10] sm:$0xff] }
  0x11   : > { %v213_v5 = vmul.f32 %v754_v0, %v174_v2  ;;  %v214_v6 = vmul.f32 %v754_v0, %v175_v3  ;;  %v177_v7 = vld [vmem:[%s759_s20 + $0x18] sm:$0xff]  ;;  %v215_v8 = vmul.f32 %v754_v0, %v176_v4  ;;  %v178_v9 = vld [vmem:[%s759_s20 + $0x20] sm:$0xff]  ;;  %v179_v10 = vld [vmem:[%s759_s20 + $0x28] sm:$0xff] }
  0x12   : > { %v216_v11 = vmul.f32 %v754_v0, %v177_v7  ;;  %v217_v12 = vmul.f32 %v754_v0, %v178_v9  ;;  %v218_v13 = vmul.f32 %v754_v0, %v179_v10  ;;  %v180_v14 = vld [vmem:[%s759_s20 + $0x30] sm:$0xff]  ;;  %v181_v15 = vld [vmem:[%s759_s20 + $0x38] sm:$0xff]  ;;  %v182_v24 = vld [vmem:[%s759_s20 + $0x40] sm:$0xff] }
  0x13   : > { %v252_v16 = vadd.f32 %v764_v1, %v213_v5  ;;  %v253_v17 = vadd.f32 %v764_v1, %v214_v6  ;;  %v254_v18 = vadd.f32 %v764_v1, %v215_v8  ;;  %v219_v19 = vmul.f32 %v754_v0, %v180_v14  ;;  %v183_v25 = vld [vmem:[%s759_s20 + $0x48] sm:$0xff]  ;;  %v184_v30 = vld [vmem:[%s759_s20 + $0x50] sm:$0xff]  ;;  %v185_v35 = vld [vmem:[%s759_s20 + $0x58] sm:$0xff] }
  0x14   : > { %v255_v20 = vadd.f32 %v764_v1, %v216_v11  ;;  %v256_v21 = vadd.f32 %v764_v1, %v217_v12  ;;  %v257_v22 = vadd.f32 %v764_v1, %v218_v13  ;;  %v220_v23 = vmul.f32 %v754_v0, %v181_v15  ;;  %v186_v36 = vld [vmem:[%s759_s20 + $0x60] sm:$0xff]  ;;  %v187_v41 = vld [vmem:[%s759_s20 + $0x68] sm:$0xff]  ;;  %v188_v42 = vld [vmem:[%s759_s20 + $0x70] sm:$0xff] }
  0x15   : > { %v284_v26 = vmax.f32 %v252_v16, 0.0  ;;  %v285_v27 = vmax.f32 %v253_v17, 0.0  ;;  %v286_v28 = vmax.f32 %v254_v18, 0.0  ;;  %v258_v29 = vadd.f32 %v764_v1, %v219_v19  ;;  %v189_v51 = vld [vmem:[%s759_s20 + $0x78] sm:$0xff]  ;;  %v190_v56 = vld [vmem:[%s759_s20 + $0x80] sm:$0xff]  ;;  %v191_v61 = vld [vmem:[%s759_s20 + $0x88] sm:$0xff] }
  0x16   : > { %v287_v31 = vmax.f32 %v255_v20, 0.0  ;;  %v288_v32 = vmax.f32 %v256_v21, 0.0  ;;  %v289_v33 = vmax.f32 %v257_v22, 0.0  ;;  %v259_v34 = vadd.f32 %v764_v1, %v220_v23  ;;  %v192_v4 = vld [vmem:[%s759_s20 + $0x90] sm:$0xff]  ;;  %v193_v5 = vld [vmem:[%s759_s20 + $0x98] sm:$0xff]  ;;  %v194_v10 = vld [vmem:[%s759_s20 + $0xa0] sm:$0xff] }
  0x17   : > { %v612_v37 = vpack.c.bf16 %v285_v27, %v284_v26  ;;  %v290_v38 = vmax.f32 %v258_v29, 0.0  ;;  %v221_v39 = vmul.f32 %v754_v0, %v182_v24  ;;  %v222_v40 = vmul.f32 %v754_v0, %v183_v25  ;;  %v195_v15 = vld [vmem:[%s759_s20 + $0xa8] sm:$0xff]  ;;  %v196_v20 = vld [vmem:[%s759_s20 + $0xb0] sm:$0xff]  ;;  %v197_v25 = vld [vmem:[%s759_s20 + $0xb8] sm:$0xff] }
  0x18   : > { %v617_v43 = vpack.c.bf16 %v287_v31, %v286_v28  ;;  %v622_v44 = vpack.c.bf16 %v289_v33, %v288_v32  ;;  %v291_v45 = vmax.f32 %v259_v34, 0.0  ;;  %v223_v46 = vmul.f32 %v754_v0, %v184_v30  ;;  %v198_v30 = vld [vmem:[%s759_s20 + $0xc0] sm:$0xff] }
  0x19   : > { %613 = vst [vmem:[%s796_s26] sm:$0xff] %v612_v37   ;;  %v260_v47 = vadd.f32 %v764_v1, %v221_v39  ;;  %v261_v48 = vadd.f32 %v764_v1, %v222_v40  ;;  %v224_v49 = vmul.f32 %v754_v0, %v185_v35  ;;  %v225_v50 = vmul.f32 %v754_v0, %v186_v36  ;;  %v199_v35 = vld [vmem:[%s759_s20 + $0xc8] sm:$0xff]  ;;  %v200_v40 = vld [vmem:[%s759_s20 + $0xd0] sm:$0xff] }
  0x1a   : > { %689 = vst [vmem:[%s796_s26 + $0x8] sm:$0xff] %v617_v43   ;;  %690 = vst [vmem:[%s796_s26 + $0x10] sm:$0xff] %v622_v44   ;;  %v627_v52 = vpack.c.bf16 %v291_v45, %v290_v38  ;;  %v262_v53 = vadd.f32 %v764_v1, %v223_v46  ;;  %v226_v54 = vmul.f32 %v754_v0, %v187_v41  ;;  %v201_v41 = vld [vmem:[%s759_s20 + $0xd8] sm:$0xff]  ;;  %v202_v46 = vld [vmem:[%s759_s20 + $0xe0] sm:$0xff] }
  0x1b   : > { %v227_v55 = vmul.f32 %v754_v0, %v188_v42  ;;  %v292_v57 = vmax.f32 %v260_v47, 0.0  ;;  %v293_v58 = vmax.f32 %v261_v48, 0.0  ;;  %v263_v59 = vadd.f32 %v764_v1, %v224_v49 }
  0x1c   : > { %v264_v60 = vadd.f32 %v764_v1, %v225_v50  ;;  %691 = vst [vmem:[%s796_s26 + $0x18] sm:$0xff] %v627_v52   ;;  %v294_v62 = vmax.f32 %v262_v53, 0.0  ;;  %v265_v63 = vadd.f32 %v764_v1, %v226_v54  ;;  %v228_v2 = vmul.f32 %v754_v0, %v189_v51  ;;  %v203_v51 = vld [vmem:[%s759_s20 + $0xe8] sm:$0xff] }
  0x1d   : > { %v266_v3 = vadd.f32 %v764_v1, %v227_v55  ;;  %v632_v6 = vpack.c.bf16 %v293_v58, %v292_v57  ;;  %v295_v7 = vmax.f32 %v263_v59, 0.0  ;;  %v229_v9 = vmul.f32 %v754_v0, %v190_v56  ;;  %v204_v56 = vld [vmem:[%s759_s20 + $0xf0] sm:$0xff] }
  0x1e   : > { %v296_v8 = vmax.f32 %v264_v60, 0.0  ;;  %v297_v11 = vmax.f32 %v265_v63, 0.0  ;;  %v267_v12 = vadd.f32 %v764_v1, %v228_v2  ;;  %v230_v14 = vmul.f32 %v754_v0, %v191_v61  ;;  %v205_v61 = vld [vmem:[%s759_s20 + $0xf8] sm:$0xff] }
  0x1f   : > { %v298_v13 = vmax.f32 %v266_v3, 0.0  ;;  %692 = vst [vmem:[%s796_s26 + $0x20] sm:$0xff] %v632_v6   ;;  %v637_v16 = vpack.c.bf16 %v295_v7, %v294_v62  ;;  %v268_v17 = vadd.f32 %v764_v1, %v229_v9  ;;  %v231_v18 = vmul.f32 %v754_v0, %v192_v4 }
  0x20   : > { %v232_v19 = vmul.f32 %v754_v0, %v193_v5  ;;  %v642_v21 = vpack.c.bf16 %v297_v11, %v296_v8  ;;  %v299_v22 = vmax.f32 %v267_v12, 0.0  ;;  %v269_v23 = vadd.f32 %v764_v1, %v230_v14 }
  0x21   : > { %v233_v24 = vmul.f32 %v754_v0, %v194_v10  ;;  %693 = vst [vmem:[%s796_s26 + $0x28] sm:$0xff] %v637_v16   ;;  %v300_v26 = vmax.f32 %v268_v17, 0.0  ;;  %v270_v27 = vadd.f32 %v764_v1, %v231_v18  ;;  %v234_v29 = vmul.f32 %v754_v0, %v195_v15 }
  0x22   : > { %v271_v28 = vadd.f32 %v764_v1, %v232_v19  ;;  %694 = vst [vmem:[%s796_s26 + $0x30] sm:$0xff] %v642_v21   ;;  %v647_v31 = vpack.c.bf16 %v299_v22, %v298_v13  ;;  %v301_v32 = vmax.f32 %v269_v23, 0.0  ;;  %v235_v34 = vmul.f32 %v754_v0, %v196_v20 }
  0x23   : > { %v272_v33 = vadd.f32 %v764_v1, %v233_v24  ;;  %v302_v36 = vmax.f32 %v270_v27, 0.0  ;;  %v273_v38 = vadd.f32 %v764_v1, %v234_v29  ;;  %v236_v39 = vmul.f32 %v754_v0, %v197_v25 }
  0x24   : > { %v303_v37 = vmax.f32 %v271_v28, 0.0  ;;  %695 = vst [vmem:[%s796_s26 + $0x38] sm:$0xff] %v647_v31   ;;  %v652_v42 = vpack.c.bf16 %v301_v32, %v300_v26  ;;  %v274_v44 = vadd.f32 %v764_v1, %v235_v34  ;;  %v237_v45 = vmul.f32 %v754_v0, %v198_v30 }
  0x25   : > { %v304_v43 = vmax.f32 %v272_v33, 0.0  ;;  %v305_v48 = vmax.f32 %v273_v38, 0.0  ;;  %v275_v49 = vadd.f32 %v764_v1, %v236_v39  ;;  %v238_v50 = vmul.f32 %v754_v0, %v199_v35 }
  0x26   : > { %v657_v47 = vpack.c.bf16 %v303_v37, %v302_v36  ;;  %696 = vst [vmem:[%s796_s26 + $0x40] sm:$0xff] %v652_v42   ;;  %v306_v52 = vmax.f32 %v274_v44, 0.0  ;;  %v276_v53 = vadd.f32 %v764_v1, %v237_v45  ;;  %v239_v54 = vmul.f32 %v754_v0, %v200_v40 }
  0x27   : > { %v240_v55 = vmul.f32 %v754_v0, %v201_v41  ;;  %v662_v57 = vpack.c.bf16 %v305_v48, %v304_v43  ;;  %v307_v58 = vmax.f32 %v275_v49, 0.0  ;;  %v277_v59 = vadd.f32 %v764_v1, %v238_v50 }
  0x28   : > { %697 = vst [vmem:[%s796_s26 + $0x48] sm:$0xff] %v657_v47   ;;  %v241_v60 = vmul.f32 %v754_v0, %v202_v46  ;;  %v308_v62 = vmax.f32 %v276_v53, 0.0  ;;  %v278_v63 = vadd.f32 %v764_v1, %v239_v54  ;;  %v242_v3 = vmul.f32 %v754_v0, %v203_v51 }
  0x29   : > { %v279_v2 = vadd.f32 %v764_v1, %v240_v55  ;;  %698 = vst [vmem:[%s796_s26 + $0x50] sm:$0xff] %v662_v57   ;;  %v667_v4 = vpack.c.bf16 %v307_v58, %v306_v52  ;;  %v309_v5 = vmax.f32 %v277_v59, 0.0  ;;  %v243_v7 = vmul.f32 %v754_v0, %v204_v56 }
  0x2a   : > { %v280_v6 = vadd.f32 %v764_v1, %v241_v60  ;;  %v310_v8 = vmax.f32 %v278_v63, 0.0  ;;  %v281_v10 = vadd.f32 %v764_v1, %v242_v3  ;;  %v244_v11 = vmul.f32 %v754_v0, %v205_v61 }
  0x2b   : > { %v311_v9 = vmax.f32 %v279_v2, 0.0  ;;  %699 = vst [vmem:[%s796_s26 + $0x58] sm:$0xff] %v667_v4   ;;  %v672_v12 = vpack.c.bf16 %v309_v5, %v308_v62  ;;  %v282_v14 = vadd.f32 %v764_v1, %v243_v7 }
  0x2c   : > { %v312_v13 = vmax.f32 %v280_v6, 0.0  ;;  %v313_v16 = vmax.f32 %v281_v10, 0.0  ;;  %v283_v17 = vadd.f32 %v764_v1, %v244_v11 }
  0x2d   : > { %v677_v15 = vpack.c.bf16 %v311_v9, %v310_v8  ;;  %700 = vst [vmem:[%s796_s26 + $0x60] sm:$0xff] %v672_v12   ;;  %v314_v18 = vmax.f32 %v282_v14, 0.0 }
  0x2e   : > { %v682_v19 = vpack.c.bf16 %v313_v16, %v312_v13  ;;  %v315_v20 = vmax.f32 %v283_v17, 0.0 }
  0x2f   : > { %701 = vst [vmem:[%s796_s26 + $0x68] sm:$0xff] %v677_v15  }
  0x30   : > { %702 = vst [vmem:[%s796_s26 + $0x70] sm:$0xff] %v682_v19   ;;  %v687_v21 = vpack.c.bf16 %v315_v20, %v314_v18 }
  0x32   : > { %703 = vst [vmem:[%s796_s26 + $0x78] sm:$0xff] %v687_v21  }
  0x33 PF: > { %s13_s12 = sadd.s32 1, %s718_s12  }
  0x34   : > { %p10_p4 = scmp.ge.s32.totalorder %s13_s12, 4  }
  0x36   :  { %12 = sbr.rel (!%p10_p4) target bundleno = 1 (0x1), region = 62 }

// kernel: residual_block.4
= control target key start
LH: loop header
LB: loop body
LE: loop exit
PB: predicated region body
PF: predicated region fallthrough
CT: control target
= control target key end

     0   :  { %s5521_s12 = smov 0   ;;  %s5987_s0 = inlined_call_operand.vmem [shape: bf16[2,3,288,128], index: 0, kind: input, shape index: {}]   ;;  %s5988_s1 = inlined_call_operand.vmem [shape: bf16[9,128,128], index: 1, kind: input, shape index: {}]   ;;  %s5989_s2 = inlined_call_operand.vmem [shape: f32[2,256,128], index: 2, kind: output, shape index: {0}]   ;;  %s5990_s3 = inlined_call_operand.vmem [shape: f32[2,128], index: 3, kind: output, shape index: {1}]  }
   0x1 LB: > { %s3790_s13 = sadd.s32 4294967295, %s5498_s12   ;;  %p3794_p0 = scmp.ge.s32.totalorder %s5498_s12, 1  ;;  %s5498_s12 = sphi %s5521_s12, %s14_s12  }
   0x2   : > { %p135_p1 = scmp.lt.s32.totalorder %s5498_s12, 3 }
   0x4   : > { %p136_p2 = pnand %p3794_p0, %p135_p1 }
   0x5   : > { %p159_p3 = scmp.lt.s32.totalorder (!%p136_p2), %s3790_s13, 1  ;;  %p3798_p4 = scmp.ne.s32.totalorder (!%p136_p2), %s3790_s13, 0 }
   0x6   : > { %139 = sbr.rel (%p136_p2) target bundleno = 576 (0x240), region = 28 }
   0xd   : > { %s160_s14 = scalar_select %p159_p3, %s3790_s13, 1 }
   0xe   : > { %173 = sbr.rel (%p3798_p4) target bundleno = 21 (0x15), region = 32  ;;  %v5500_v0 = vmov (!%p3798_p4), 0.0  }
   0xf   : > { %s5258_s15 = smul.u32 432, %s160_s14  ;;  %s4337_s16 = sshll.u32 %s160_s14, 8  ;;  %174 = vst [vmem:[%s5990_s3] sm:$0x3] (!%p3798_p4), %v5500_v0 }
  0x10   : > { %s5532_s19 = scalar_lea.vmem %s5989_s2, %s4337_s16 }
  0x11   : > { %s5537_s22 = scalar_lea.vmem %s5987_s0, %s5258_s15 }
  0x15 PF: > { %v5268_v1 = vld [vmem:[%s5988_s1 + $0x40] sm:$0xff]   ;;  %v5270_v3 = vld [vmem:[%s5988_s1 + $0x48] sm:$0xff]   ;;  %v5272_v5 = vld [vmem:[%s5988_s1 + $0x50] sm:$0xff]   ;;  %vm3725_vm0 = vcmask 1040384  }
  0x16   : > { %v5269_v2 = vld [vmem:[%s5988_s1 + $0x100] sm:$0xff]   ;;  %4554 = vmatprep.subr.bf16.mxu1 %v5268_v1  ;;  %v5271_v4 = vld [vmem:[%s5988_s1 + $0x108] sm:$0xff]   ;;  %v5273_v6 = vld [vmem:[%s5988_s1 + $0x110] sm:$0xff]  }
  0x17   : > { %4746 = vmatprep.subr.bf16.mxu0 %v5269_v2  ;;  %4555 = vmatpush3.bf16.msra.mxu1 %v5268_v1  ;;  %v5274_v7 = vld [vmem:[%s5988_s1 + $0x58] sm:$0xff]   ;;  %v5276_v9 = vld [vmem:[%s5988_s1 + $0x60] sm:$0xff]   ;;  %v5278_v11 = vld [vmem:[%s5988_s1 + $0x68] sm:$0xff]  }
  0x18   : > { %4747 = vmatpush3.bf16.msra.mxu0 %v5269_v2  ;;  %4556 = vmatprep.subr.bf16.mxu1 %v5270_v3  ;;  %v5275_v8 = vld [vmem:[%s5988_s1 + $0x118] sm:$0xff]   ;;  %v5277_v10 = vld [vmem:[%s5988_s1 + $0x120] sm:$0xff]   ;;  %v5279_v12 = vld [vmem:[%s5988_s1 + $0x128] sm:$0xff]  }
  0x19   : > { %4748 = vmatprep.subr.bf16.mxu0 %v5271_v4  ;;  %v5284_v13 = vld [vmem:[%s5537_s22 + $0x90] sm:$0xff]   ;;  %v5285_v14 = vld [vmem:[%s5537_s22 + $0x98] sm:$0xff]   ;;  %v5287_v20 = vld [vmem:[%s5988_s1] sm:$0xff]  }
  0x1a   : > { %4570 = vmatprep.mubr.bf16.mxu1 %v5284_v13  ;;  %4762 = vmatprep.mubr.bf16.mxu0 %v5285_v14  ;;  %v5280_v15 = vld [vmem:[%s5988_s1 + $0x70] sm:$0xff]   ;;  %v5282_v17 = vld [vmem:[%s5988_s1 + $0x78] sm:$0xff]   ;;  %v5289_v21 = vld [vmem:[%s5988_s1 + $0x140] sm:$0xff]  }
  0x1b   : > { %4557 = vmatpush3.bf16.msra.mxu1 %v5270_v3  ;;  %v5281_v16 = vld [vmem:[%s5988_s1 + $0x130] sm:$0xff]   ;;  %v5283_v18 = vld [vmem:[%s5988_s1 + $0x138] sm:$0xff]   ;;  %v5288_v22 = vld [vmem:[%s5537_s22 + $0xa0] sm:$0xff]  }
  0x1c   : > { %4749 = vmatpush3.bf16.msra.mxu0 %v5271_v4  ;;  %4558 = vmatprep.subr.bf16.mxu1 %v5272_v5  ;;  %v5286_v19 = vld [vmem:[%s5537_s22 + $0x98] sm:$0xff]   ;;  %v5290_v23 = vld [vmem:[%s5988_s1 + $0x148] sm:$0xff]   ;;  %v5291_v24 = vld [vmem:[%s5537_s22 + $0xa0] sm:$0xff]  }
  0x1d   : > { %4750 = vmatprep.subr.bf16.mxu0 %v5273_v6  ;;  %v5292_v25 = vld [vmem:[%s5537_s22 + $0xa8] sm:$0xff]   ;;  %v5301_v28 = vld [vmem:[%s5988_s1 + $0x10] sm:$0xff]   ;;  %v5299_v32 = vld [vmem:[%s5537_s22 + $0xb8] sm:$0xff]  }
  0x1e   : > { %v5294_v26 = vld [vmem:[%s5988_s1 + $0x8] sm:$0xff]   ;;  %v5296_v29 = vld [vmem:[%s5988_s1 + $0x150] sm:$0xff]   ;;  %v5297_v33 = vld [vmem:[%s5988_s1 + $0x158] sm:$0xff]  }
  0x1f   : > { %4559 = vmatpush3.bf16.msra.mxu1 %v5272_v5  ;;  %v5293_v27 = vld [vmem:[%s5537_s22 + $0xa8] sm:$0xff]   ;;  %v5295_v30 = vld [vmem:[%s5537_s22 + $0xb0] sm:$0xff]   ;;  %v5308_v34 = vld [vmem:[%s5988_s1 + $0x18] sm:$0xff]  }
  0x20   : > { %4751 = vmatpush3.bf16.msra.mxu0 %v5273_v6  ;;  %4560 = vmatprep.subr.bf16.mxu1 %v5274_v7  ;;  %v5298_v31 = vld [vmem:[%s5537_s22 + $0xb0] sm:$0xff]   ;;  %v5300_v35 = vld [vmem:[%s5537_s22 + $0xb8] sm:$0xff]   ;;  %v5302_v36 = vld [vmem:[%s5537_s22 + $0xc0] sm:$0xff]  }
  0x21   : > { %4752 = vmatprep.subr.bf16.mxu0 %v5275_v8  ;;  %v5303_v37 = vld [vmem:[%s5988_s1 + $0x160] sm:$0xff]   ;;  %v5306_v40 = vld [vmem:[%s5537_s22 + $0xc8] sm:$0xff]   ;;  %v5310_v43 = vld [vmem:[%s5988_s1 + $0x170] sm:$0xff]  }
  0x22   : > { %v5305_v38 = vld [vmem:[%s5537_s22 + $0xc0] sm:$0xff]   ;;  %v5304_v41 = vld [vmem:[%s5988_s1 + $0x168] sm:$0xff]   ;;  %v5309_v45 = vld [vmem:[%s5537_s22 + $0xd0] sm:$0xff]  }
  0x23   : > { %4561 = vmatpush3.bf16.msra.mxu1 %v5274_v7  ;;  %v5315_v39 = vld [vmem:[%s5988_s1 + $0x20] sm:$0xff]   ;;  %v5307_v42 = vld [vmem:[%s5537_s22 + $0xc8] sm:$0xff]   ;;  %v5312_v46 = vld [vmem:[%s5537_s22 + $0xd0] sm:$0xff]  }
  0x24   : > { %4753 = vmatpush3.bf16.msra.mxu0 %v5275_v8  ;;  %4562 = vmatprep.subr.bf16.mxu1 %v5276_v9  ;;  %v5321_v44 = vld [vmem:[%s5988_s1 + $0x28] sm:$0xff]   ;;  %v5311_v48 = vld [vmem:[%s5988_s1 + $0x178] sm:$0xff]   ;;  %v5327_v49 = vld [vmem:[%s5988_s1 + $0x30] sm:$0xff]  }
  0x25   : > { %4754 = vmatprep.subr.bf16.mxu0 %v5277_v10  ;;  %v5313_v47 = vld [vmem:[%s5537_s22 + $0x128] sm:$0xff]   ;;  %v5314_v50 = vld [vmem:[%s5537_s22 + $0xd8] sm:$0xff]   ;;  %v5316_v51 = vld [vmem:[%s5537_s22 + $0x130] sm:$0xff]  }
  0x26   : > { %v5317_v52 = vld [vmem:[%s5988_s1 + $0x180] sm:$0xff]   ;;  %v5319_v54 = vld [vmem:[%s5537_s22 + $0x138] sm:$0xff]   ;;  %v5323_v55 = vld [vmem:[%s5988_s1 + $0x188] sm:$0xff]  }
  0x27   : > { %4563 = vmatpush3.bf16.msra.mxu1 %v5276_v9  ;;  %v5318_v53 = vld [vmem:[%s5537_s22 + $0xe0] sm:$0xff]   ;;  %v5333_v56 = vld [vmem:[%s5988_s1 + $0x38] sm:$0xff]   ;;  %v5320_v57 = vld [vmem:[%s5537_s22 + $0xe8] sm:$0xff]  }
  0x28   : > { %4755 = vmatpush3.bf16.msra.mxu0 %v5277_v10  ;;  %4564 = vmatprep.subr.bf16.mxu1 %v5278_v11  ;;  %v5322_v58 = vld [vmem:[%s5537_s22 + $0x140] sm:$0xff]   ;;  %v5329_v59 = vld [vmem:[%s5988_s1 + $0x190] sm:$0xff]   ;;  %v5325_v62 = vld [vmem:[%s5537_s22 + $0x148] sm:$0xff]  }
  0x29   : > { %4756 = vmatprep.subr.bf16.mxu0 %v5279_v12  ;;  %v5324_v60 = vld [vmem:[%s5537_s22 + $0xf0] sm:$0xff]   ;;  %v5339_v61 = vld [vmem:[%s5988_s1 + $0x80] sm:$0xff]   ;;  %v5335_v63 = vld [vmem:[%s5988_s1 + $0x198] sm:$0xff]  }
  0x2a   : > { %v5326_v0 = vld [vmem:[%s5537_s22 + $0xf8] sm:$0xff]   ;;  %v5341_v1 = vld [vmem:[%s5988_s1 + $0x1a0] sm:$0xff]   ;;  %v5328_v2 = vld [vmem:[%s5537_s22 + $0x150] sm:$0xff]  }
  0x2b   : > { %4565 = vmatpush3.bf16.msra.mxu1 %v5278_v11  ;;  %v5330_v3 = vld [vmem:[%s5537_s22 + $0x100] sm:$0xff]   ;;  %v5331_v4 = vld [vmem:[%s5537_s22 + $0x158] sm:$0xff]   ;;  %v5347_v5 = vld [vmem:[%s5988_s1 + $0x1a8] sm:$0xff]  }
  0x2c   : > { %4757 = vmatpush3.bf16.msra.mxu0 %v5279_v12  ;;  %4566 = vmatprep.subr.bf16.mxu1 %v5280_v15  ;;  %v5332_v6 = vld [vmem:[%s5537_s22 + $0x108] sm:$0xff]   ;;  %v5353_v7 = vld [vmem:[%s5988_s1 + $0x1b0] sm:$0xff]   ;;  %v5334_v8 = vld [vmem:[%s5537_s22 + $0x160] sm:$0xff]  }
  0x2d   : > { %4758 = vmatprep.subr.bf16.mxu0 %v5281_v16  ;;  %v5336_v9 = vld [vmem:[%s5537_s22] sm:$0xff]   ;;  %v5337_v10 = vld [vmem:[%s5537_s22 + $0x168] sm:$0xff]   ;;  %v5359_v11 = vld [vmem:[%s5988_s1 + $0x1b8] sm:$0xff]  }
  0x2e   : > { %v5338_v12 = vld [vmem:[%s5537_s22 + $0x8] sm:$0xff]   ;;  %v5340_v13 = vld [vmem:[%s5537_s22 + $0x170] sm:$0xff]  }
  0x2f   : > { %4567 = vmatpush3.bf16.msra.mxu1 %v5280_v15  ;;  %v5342_v14 = vld [vmem:[%s5537_s22 + $0x10] sm:$0xff]   ;;  %v5343_v15 = vld [vmem:[%s5537_s22 + $0x178] sm:$0xff]  }
  0x30   : > { %4759 = vmatpush3.bf16.msra.mxu0 %v5281_v16  ;;  %4568 = vmatprep.subr.bf16.mxu1 %v5282_v17  ;;  %v5345_v16 = vld [vmem:[%s5988_s1 + $0x88] sm:$0xff]  }
  0x31   : > { %4760 = vmatprep.subr.bf16.mxu0 %v5283_v18 }
  0x33   : > { %4569 = vmatpush3.bf16.msra.mxu1 %v5282_v17  ;;  %v5365_v17 = vld [vmem:[%s5988_s1 + $0x1c0] sm:$0xff]  }
  0x34   : > { %4761 = vmatpush3.bf16.msra.mxu0 %v5283_v18  ;;  %4602 = vmatprep.subr.bf16.mxu1 %v5287_v20  ;;  %v5351_v18 = vld [vmem:[%s5988_s1 + $0x90] sm:$0xff]  }
  0x35   : > { %4794 = vmatprep.subr.bf16.mxu0 %v5289_v21 }
  0x36   : > { %4571 = vmatmul.mubr.bf16.vlgmr.msra.gmra.mrb[0].mxu1 %v5286_v19  ;;  %v5344_v19 = vld [vmem:[%s5537_s22 + $0x18] sm:$0xff]  }
  0x37   : > { %4763 = vmatmul.mubr.bf16.vlgmr.msra.gmra.mrb[0].mxu0 %v5288_v22  ;;  %4603 = vmatpush3.bf16.msra.mxu1 %v5287_v20  ;;  %v5346_v20 = vld [vmem:[%s5537_s22 + $0x180] sm:$0xff]   ;;  %v5349_v22 = vld [vmem:[%s5537_s22 + $0x188] sm:$0xff]  }
  0x38   : > { %4795 = vmatpush3.bf16.msra.mxu0 %v5289_v21  ;;  %4574 = vmatprep.mubr.bf16.mxu1 %v5291_v24  ;;  %v5348_v21 = vld [vmem:[%s5537_s22 + $0x20] sm:$0xff]   ;;  %v5350_v24 = vld [vmem:[%s5537_s22 + $0x28] sm:$0xff]  }
  0x39   : > { %4796 = vmatprep.subr.bf16.mxu0 %v5290_v23  ;;  %4766 = vmatprep.mubr.bf16.mxu0 %v5292_v25  ;;  %v5363_v25 = vld [vmem:[%s5988_s1 + $0xa0] sm:$0xff]  }
  0x3a   : > { %4604 = vmatprep.subr.bf16.mxu1 %v5294_v26 }
  0x3b   : > { %4605 = vmatpush3.bf16.msra.mxu1 %v5294_v26  ;;  %v5352_v26 = vld [vmem:[%s5537_s22 + $0x190] sm:$0xff]  }
  0x3c   : > { %4797 = vmatpush3.bf16.msra.mxu0 %v5290_v23  ;;  %4606 = vmatprep.subr.bf16.mxu1 %v5301_v28  ;;  %v5357_v23 = vld [vmem:[%s5988_s1 + $0x98] sm:$0xff]  }
  0x3d   : > { %4798 = vmatprep.subr.bf16.mxu0 %v5296_v29 }
  0x3e   : > { %4575 = vmatmul.mubr.bf16.gmra.mrb[4].mxu1 %v5293_v27  ;;  %v5354_v27 = vld [vmem:[%s5537_s22 + $0x30] sm:$0xff]  }
  0x3f   : > { %4767 = vmatmul.mubr.bf16.gmra.mrb[4].mxu0 %v5295_v30  ;;  %4578 = vmatprep.mubr.bf16.mxu1 %v5298_v31  ;;  %v5356_v30 = vld [vmem:[%s5537_s22 + $0x38] sm:$0xff]   ;;  %v5375_v31 = vld [vmem:[%s5988_s1 + $0xb0] sm:$0xff]  }
  0x40   : > { %4799 = vmatpush3.bf16.msra.mxu0 %v5296_v29  ;;  %4770 = vmatprep.mubr.bf16.mxu0 %v5299_v32  ;;  %v5369_v29 = vld [vmem:[%s5988_s1 + $0xa8] sm:$0xff]   ;;  %v5358_v32 = vld [vmem:[%s5537_s22 + $0x1a0] sm:$0xff]  }
  0x41   : > { %4800 = vmatprep.subr.bf16.mxu0 %v5297_v33  ;;  %4607 = vmatpush3.bf16.msra.mxu1 %v5301_v28  ;;  %v5355_v28 = vld [vmem:[%s5537_s22 + $0x198] sm:$0xff]  }
  0x42   : > { %4608 = vmatprep.subr.bf16.mxu1 %v5308_v34 }
  0x44   : > { %4801 = vmatpush3.bf16.msra.mxu0 %v5297_v33  ;;  %v5360_v33 = vld [vmem:[%s5537_s22 + $0x40] sm:$0xff]  }
  0x45   : > { %4802 = vmatprep.subr.bf16.mxu0 %v5303_v37  ;;  %4609 = vmatpush3.bf16.msra.mxu1 %v5308_v34  ;;  %v5361_v34 = vld [vmem:[%s5537_s22 + $0x10] sm:$0xff]  }
  0x46   : > { %4579 = vmatmul.mubr.bf16.gmra.mrb[8].mxu1 %v5300_v35  ;;  %4610 = vmatprep.subr.bf16.mxu1 %v5315_v39  ;;  %v5381_v35 = vld [vmem:[%s5988_s1 + $0xb8] sm:$0xff]  }
  0x47   : > { %4771 = vmatmul.mubr.bf16.gmra.mrb[8].mxu0 %v5302_v36  ;;  %4582 = vmatprep.mubr.bf16.mxu1 %v5305_v38  ;;  %v5362_v36 = vld [vmem:[%s5537_s22 + $0x48] sm:$0xff]   ;;  %v5364_v38 = vld [vmem:[%s5537_s22 + $0x18] sm:$0xff]  }
  0x48   : > { %4803 = vmatpush3.bf16.msra.mxu0 %v5303_v37  ;;  %4774 = vmatprep.mubr.bf16.mxu0 %v5306_v40  ;;  %v5743_v37 = vld [vmem:[%s5988_s1 + $0xc0] sm:$0xff]  }
  0x49   : > { %4804 = vmatprep.subr.bf16.mxu0 %v5304_v41  ;;  %4611 = vmatpush3.bf16.msra.mxu1 %v5315_v39  ;;  %v5366_v39 = vld [vmem:[%s5537_s22 + $0x50] sm:$0xff]   ;;  %v5367_v40 = vld [vmem:[%s5537_s22 + $0x20] sm:$0xff]  }
  0x4a   : > { %4612 = vmatprep.subr.bf16.mxu1 %v5321_v44 }
  0x4c   : > { %4805 = vmatpush3.bf16.msra.mxu0 %v5304_v41  ;;  %v5371_v41 = vld [vmem:[%s5988_s1 + $0x1c8] sm:$0xff]  }
  0x4d   : > { %4806 = vmatprep.subr.bf16.mxu0 %v5310_v43  ;;  %4613 = vmatpush3.bf16.msra.mxu1 %v5321_v44  ;;  %v5370_v44 = vld [vmem:[%s5537_s22 + $0x28] sm:$0xff]  }
  0x4e   : > { %4583 = vmatmul.mubr.bf16.gmra.mrb[12].mxu1 %v5307_v42  ;;  %4614 = vmatprep.subr.bf16.mxu1 %v5327_v49  ;;  %v5368_v42 = vld [vmem:[%s5537_s22 + $0x58] sm:$0xff]  }
  0x4f   : > { %4775 = vmatmul.mubr.bf16.gmra.mrb[12].mxu0 %v5309_v45  ;;  %4586 = vmatprep.mubr.bf16.mxu1 %v5312_v46  ;;  %v5372_v45 = vld [vmem:[%s5537_s22 + $0x60] sm:$0xff]   ;;  %v5373_v46 = vld [vmem:[%s5537_s22 + $0x30] sm:$0xff]  }
  0x50   : > { %4807 = vmatpush3.bf16.msra.mxu0 %v5310_v43  ;;  %4810 = vmatprep.mubr.bf16.mxu0 %v5313_v47  ;;  %v5377_v43 = vld [vmem:[%s5988_s1 + $0x1d0] sm:$0xff]   ;;  %v5383_v47 = vld [vmem:[%s5988_s1 + $0x1d8] sm:$0xff]  }
  0x51   : > { %4808 = vmatprep.subr.bf16.mxu0 %v5311_v48  ;;  %4615 = vmatpush3.bf16.msra.mxu1 %v5327_v49  ;;  %v5389_v49 = vld [vmem:[%s5988_s1 + $0x1e0] sm:$0xff]  }
  0x52   : > { %4616 = vmatprep.subr.bf16.mxu1 %v5333_v56 }
  0x54   : > { %4809 = vmatpush3.bf16.msra.mxu0 %v5311_v48  ;;  %v5374_v48 = vld [vmem:[%s5537_s22 + $0x68] sm:$0xff]  }
  0x55   : > { %4842 = vmatprep.subr.bf16.mxu0 %v5317_v52  ;;  %4617 = vmatpush3.bf16.msra.mxu1 %v5333_v56  ;;  %v5382_v56 = vld [vmem:[%s5537_s22 + $0x48] sm:$0xff]  }
  0x56   : > { %4587 = vmatmul.mubr.bf16.gmra.mrb[16].mxu1 %v5314_v50  ;;  %4650 = vmatprep.subr.bf16.mxu1 %v5339_v61  ;;  %v5376_v50 = vld [vmem:[%s5537_s22 + $0x38] sm:$0xff]  }
  0x57   : > { %4811 = vmatmul.mubr.bf16.vlgmr.msra.gmra.mrb[0].mxu0 %v5316_v51  ;;  %4590 = vmatprep.mubr.bf16.mxu1 %v5318_v53  ;;  %v5378_v51 = vld [vmem:[%s5537_s22 + $0x70] sm:$0xff]   ;;  %v5395_v53 = vld [vmem:[%s5988_s1 + $0x1e8] sm:$0xff]  }
  0x58   : > { %4843 = vmatpush3.bf16.msra.mxu0 %v5317_v52  ;;  %4814 = vmatprep.mubr.bf16.mxu0 %v5319_v54  ;;  %v5379_v52 = vld [vmem:[%s5537_s22 + $0x40] sm:$0xff]   ;;  %v5380_v54 = vld [vmem:[%s5537_s22 + $0x78] sm:$0xff]  }
  0x59   : > { %4844 = vmatprep.subr.bf16.mxu0 %v5323_v55 }
  0x5c   : > { %4845 = vmatpush3.bf16.msra.mxu0 %v5323_v55  ;;  %v5401_v55 = vld [vmem:[%s5988_s1 + $0x1f0] sm:$0xff]  }
  0x5d   : > { %4846 = vmatprep.subr.bf16.mxu0 %v5329_v59 }
  0x5e   : > { %4591 = vmatmul.mubr.bf16.gmra.mrb[20].mxu1 %v5320_v57  ;;  %v5384_v57 = vld [vmem:[%s5537_s22 + $0x120] sm:$0xff]  }
  0x5f   : > { %4815 = vmatmul.mubr.bf16.gmra.mrb[4].mxu0 %v5322_v58  ;;  %4594 = vmatprep.mubr.bf16.mxu1 %v5324_v60  ;;  %v5385_v58 = vld [vmem:[%s5537_s22 + $0x50] sm:$0xff]   ;;  %v5386_v60 = vld [vmem:[%s5537_s22 + $0x128] sm:$0xff]  }
  0x60   : > { %4818 = vmatprep.mubr.bf16.mxu0 %v5325_v62  ;;  %4847 = vmatpush3.bf16.msra.mxu0 %v5329_v59  ;;  %v5407_v59 = vld [vmem:[%s5988_s1 + $0x1f8] sm:$0xff]  }
  0x61   : > { %4848 = vmatprep.subr.bf16.mxu0 %v5335_v63  ;;  %v5388_v62 = vld [vmem:[%s5537_s22 + $0x58] sm:$0xff]  }
  0x64   : > { %4849 = vmatpush3.bf16.msra.mxu0 %v5335_v63  ;;  %v5390_v63 = vld [vmem:[%s5537_s22 + $0x130] sm:$0xff]  }
  0x65   : > { %4850 = vmatprep.subr.bf16.mxu0 %v5341_v1 }
  0x66   : > { %4595 = vmatmul.mubr.bf16.gmra.mrb[24].mxu1 %v5326_v0  ;;  %v5391_v0 = vld [vmem:[%s5537_s22 + $0x60] sm:$0xff]  }
  0x67   : > { %4819 = vmatmul.mubr.bf16.gmra.mrb[8].mxu0 %v5328_v2  ;;  %4598 = vmatprep.mubr.bf16.mxu1 %v5330_v3  ;;  %v5399_v2 = vld [vmem:[%s5988_s1 + $0xd0] sm:$0xff]   ;;  %v5392_v3 = vld [vmem:[%s5537_s22 + $0x138] sm:$0xff]  }
  0x68   : > { %4822 = vmatprep.mubr.bf16.mxu0 %v5331_v4  ;;  %4851 = vmatpush3.bf16.msra.mxu0 %v5341_v1  ;;  %v5393_v1 = vld [vmem:[%s5988_s1 + $0xc8] sm:$0xff]  }
  0x69   : > { %4852 = vmatprep.subr.bf16.mxu0 %v5347_v5  ;;  %v5394_v4 = vld [vmem:[%s5537_s22 + $0x68] sm:$0xff]  }
  0x6c   : > { %4853 = vmatpush3.bf16.msra.mxu0 %v5347_v5  ;;  %v5396_v5 = vld [vmem:[%s5537_s22 + $0x140] sm:$0xff]  }
  0x6d   : > { %4854 = vmatprep.subr.bf16.mxu0 %v5353_v7 }
  0x6e   : > { %4599 = vmatmul.mubr.bf16.gmra.mrb[28].mxu1 %v5332_v6  ;;  %v5397_v6 = vld [vmem:[%s5537_s22 + $0x70] sm:$0xff]  }
  0x6f   : > { %4823 = vmatmul.mubr.bf16.gmra.mrb[12].mxu0 %v5334_v8  ;;  %4618 = vmatprep.mubr.bf16.mxu1 %v5336_v9  ;;  %v5398_v8 = vld [vmem:[%s5537_s22 + $0x148] sm:$0xff]   ;;  %v5411_v9 = vld [vmem:[%s5988_s1 + $0xe0] sm:$0xff]  }
  0x70   : > { %4826 = vmatprep.mubr.bf16.mxu0 %v5337_v10  ;;  %4855 = vmatpush3.bf16.msra.mxu0 %v5353_v7  ;;  %v5405_v7 = vld [vmem:[%s5988_s1 + $0xd8] sm:$0xff]  }
  0x71   : > { %4856 = vmatprep.subr.bf16.mxu0 %v5359_v11  ;;  %v5400_v10 = vld [vmem:[%s5537_s22 + $0x78] sm:$0xff]  }
  0x74   : > { %4857 = vmatpush3.bf16.msra.mxu0 %v5359_v11  ;;  %v5402_v11 = vld [vmem:[%s5537_s22 + $0x150] sm:$0xff]  }
  0x75   : > { %4890 = vmatprep.subr.bf16.mxu0 %v5365_v17 }
  0x76   : > { %4619 = vmatmul.mubr.bf16.vlgmr.msra.gmra.mrb[0].mxu1 %v5338_v12  ;;  %v5403_v12 = vld [vmem:[%s5537_s22 + $0x80] sm:$0xff]  }
  0x77   : > { %4827 = vmatmul.mubr.bf16.gmra.mrb[16].mxu0 %v5340_v13  ;;  %4651 = vmatpush3.bf16.msra.mxu1 %v5339_v61  ;;  %v5786_v61 = vld [vmem:[%s5988_s1 + $0x200] sm:$0xff]   ;;  %v5417_v13 = vld [vmem:[%s5988_s1 + $0xe8] sm:$0xff]  }
  0x78   : > { %4622 = vmatprep.mubr.bf16.mxu1 %v5342_v14  ;;  %4830 = vmatprep.mubr.bf16.mxu0 %v5343_v15  ;;  %v5404_v14 = vld [vmem:[%s5537_s22 + $0x158] sm:$0xff]   ;;  %v5423_v15 = vld [vmem:[%s5988_s1 + $0xf0] sm:$0xff]  }
  0x79   : > { %4652 = vmatprep.subr.bf16.mxu1 %v5345_v16 }
  0x7b   : > { %4653 = vmatpush3.bf16.msra.mxu1 %v5345_v16  ;;  %v5406_v16 = vld [vmem:[%s5537_s22 + $0x88] sm:$0xff]  }
  0x7c   : > { %4654 = vmatprep.subr.bf16.mxu1 %v5351_v18 }
  0x7e   : > { %4623 = vmatmul.mubr.bf16.gmra.mrb[4].mxu1 %v5344_v19  ;;  %v5429_v19 = vld [vmem:[%s5988_s1 + $0xf8] sm:$0xff]  }
  0x7f   : > { %4831 = vmatmul.mubr.bf16.gmra.mrb[20].mxu0 %v5346_v20  ;;  %4626 = vmatprep.mubr.bf16.mxu1 %v5348_v21  ;;  %v5410_v20 = vld [vmem:[%s5537_s22 + $0x168] sm:$0xff]  }
  0x80   : > { %4834 = vmatprep.mubr.bf16.mxu0 %v5349_v22  ;;  %4655 = vmatpush3.bf16.msra.mxu1 %v5351_v18  ;;  %v5409_v18 = vld [vmem:[%s5537_s22 + $0xa0] sm:$0xff]   ;;  %v5412_v21 = vld [vmem:[%s5537_s22 + $0xa8] sm:$0xff]   ;;  %v5414_v22 = vld [vmem:[%s5537_s22 + $0x170] sm:$0xff]  }
  0x81   : > { %4656 = vmatprep.subr.bf16.mxu1 %v5357_v23 }
  0x84   : > { %4657 = vmatpush3.bf16.msra.mxu1 %v5357_v23  ;;  %v5415_v23 = vld [vmem:[%s5537_s22 + $0xb0] sm:$0xff]  }
  0x85   : > { %4658 = vmatprep.subr.bf16.mxu1 %v5363_v25 }
  0x86   : > { %4627 = vmatmul.mubr.bf16.gmra.mrb[8].mxu1 %v5350_v24  ;;  %v5419_v24 = vld [vmem:[%s5988_s1 + $0x208] sm:$0xff]  }
  0x87   : > { %4835 = vmatmul.mubr.bf16.gmra.mrb[24].mxu0 %v5352_v26  ;;  %4630 = vmatprep.mubr.bf16.mxu1 %v5354_v27  ;;  %v5416_v26 = vld [vmem:[%s5537_s22 + $0x178] sm:$0xff]   ;;  %v5425_v27 = vld [vmem:[%s5988_s1 + $0x210] sm:$0xff]  }
  0x88   : > { %4838 = vmatprep.mubr.bf16.mxu0 %v5355_v28  ;;  %4659 = vmatpush3.bf16.msra.mxu1 %v5363_v25  ;;  %v5484_v25 = vld [vmem:[%s5988_s1 + $0x100] sm:$0xff]   ;;  %v5418_v28 = vld [vmem:[%s5537_s22 + $0xb8] sm:$0xff]  }
  0x89   : > { %4660 = vmatprep.subr.bf16.mxu1 %v5369_v29 }
  0x8c   : > { %4661 = vmatpush3.bf16.msra.mxu1 %v5369_v29  ;;  %v5420_v29 = vld [vmem:[%s5537_s22 + $0x180] sm:$0xff]  }
  0x8d   : > { %4662 = vmatprep.subr.bf16.mxu1 %v5375_v31 }
  0x8e   : > { %4631 = vmatmul.mubr.bf16.gmra.mrb[12].mxu1 %v5356_v30  ;;  %v5421_v30 = vld [vmem:[%s5537_s22 + $0xc0] sm:$0xff]  }
  0x8f   : > { %4839 = vmatmul.mubr.bf16.gmra.mrb[28].mxu0 %v5358_v32  ;;  %4634 = vmatprep.mubr.bf16.mxu1 %v5360_v33  ;;  %v5422_v32 = vld [vmem:[%s5537_s22 + $0x188] sm:$0xff]   ;;  %v5436_v33 = vld [vmem:[%s5988_s1 + $0x220] sm:$0xff]  }
  0x90   : > { %4858 = vmatprep.mubr.bf16.mxu0 %v5361_v34  ;;  %4663 = vmatpush3.bf16.msra.mxu1 %v5375_v31  ;;  %v5431_v31 = vld [vmem:[%s5988_s1 + $0x218] sm:$0xff]   ;;  %v5424_v34 = vld [vmem:[%s5537_s22 + $0xc8] sm:$0xff]  }
  0x91   : > { %4664 = vmatprep.subr.bf16.mxu1 %v5381_v35 }
  0x94   : > { %4665 = vmatpush3.bf16.msra.mxu1 %v5381_v35  ;;  %v5426_v35 = vld [vmem:[%s5537_s22 + $0x190] sm:$0xff]  }
  0x95   : > { %4698 = vmatprep.subr.bf16.mxu1 %v5743_v37 }
  0x96   : > { %4635 = vmatmul.mubr.bf16.gmra.mrb[16].mxu1 %v5362_v36  ;;  %v5427_v36 = vld [vmem:[%s5537_s22 + $0xd0] sm:$0xff]  }
  0x97   : > { %4859 = vmatmul.mubr.bf16.vlgmr.msra.gmra.mrb[0].mxu0 %v5364_v38  ;;  %4638 = vmatprep.mubr.bf16.mxu1 %v5366_v39  ;;  %v5428_v38 = vld [vmem:[%s5537_s22 + $0x198] sm:$0xff]   ;;  %v5446_v39 = vld [vmem:[%s5988_s1 + $0x230] sm:$0xff]  }
  0x98   : > { %4891 = vmatpush3.bf16.msra.mxu0 %v5365_v17  ;;  %4862 = vmatprep.mubr.bf16.mxu0 %v5367_v40  ;;  %v5408_v17 = vld [vmem:[%s5537_s22 + $0x160] sm:$0xff]   ;;  %v5430_v40 = vld [vmem:[%s5537_s22 + $0xd8] sm:$0xff]  }
  0x99   : > { %4892 = vmatprep.subr.bf16.mxu0 %v5371_v41 }
  0x9c   : > { %4893 = vmatpush3.bf16.msra.mxu0 %v5371_v41  ;;  %v5432_v41 = vld [vmem:[%s5537_s22 + $0x8] sm:$0xff]  }
  0x9d   : > { %4894 = vmatprep.subr.bf16.mxu0 %v5377_v43 }
  0x9e   : > { %4639 = vmatmul.mubr.bf16.gmra.mrb[20].mxu1 %v5368_v42  ;;  %v5433_v42 = vld [vmem:[%s5537_s22 + $0xe0] sm:$0xff]  }
  0x9f   : > { %4863 = vmatmul.mubr.bf16.gmra.mrb[4].mxu0 %v5370_v44  ;;  %4642 = vmatprep.mubr.bf16.mxu1 %v5372_v45  ;;  %v5434_v44 = vld [vmem:[%s5537_s22 + $0x10] sm:$0xff]   ;;  %v5435_v45 = vld [vmem:[%s5537_s22 + $0xe8] sm:$0xff]  }
  0xa0   : > { %4866 = vmatprep.mubr.bf16.mxu0 %v5373_v46  ;;  %4895 = vmatpush3.bf16.msra.mxu0 %v5377_v43  ;;  %v5451_v43 = vld [vmem:[%s5988_s1 + $0x238] sm:$0xff]  }
  0xa1   : > { %4896 = vmatprep.subr.bf16.mxu0 %v5383_v47  ;;  %v5437_v46 = vld [vmem:[%s5537_s22 + $0x18] sm:$0xff]  }
  0xa4   : > { %4897 = vmatpush3.bf16.msra.mxu0 %v5383_v47  ;;  %v5438_v47 = vld [vmem:[%s5537_s22 + $0xf0] sm:$0xff]  }
  0xa5   : > { %4898 = vmatprep.subr.bf16.mxu0 %v5389_v49 }
  0xa6   : > { %4643 = vmatmul.mubr.bf16.gmra.mrb[24].mxu1 %v5374_v48  ;;  %v5485_v48 = vld [vmem:[%s5988_s1 + $0x108] sm:$0xff]  }
  0xa7   : > { %4867 = vmatmul.mubr.bf16.gmra.mrb[8].mxu0 %v5376_v50  ;;  %4646 = vmatprep.mubr.bf16.mxu1 %v5378_v51  ;;  %v5440_v50 = vld [vmem:[%s5537_s22 + $0xf8] sm:$0xff]   ;;  %v5442_v51 = vld [vmem:[%s5537_s22 + $0x28] sm:$0xff]  }
  0xa8   : > { %4870 = vmatprep.mubr.bf16.mxu0 %v5379_v52  ;;  %4899 = vmatpush3.bf16.msra.mxu0 %v5389_v49  ;;  %v5439_v49 = vld [vmem:[%s5537_s22 + $0x20] sm:$0xff]  }
  0xa9   : > { %4900 = vmatprep.subr.bf16.mxu0 %v5395_v53  ;;  %v5443_v52 = vld [vmem:[%s5537_s22 + $0x100] sm:$0xff]  }
  0xac   : > { %4901 = vmatpush3.bf16.msra.mxu0 %v5395_v53  ;;  %v5486_v53 = vld [vmem:[%s5988_s1 + $0x110] sm:$0xff]  }
  0xad   : > { %4902 = vmatprep.subr.bf16.mxu0 %v5401_v55 }
  0xae   : > { %4647 = vmatmul.mubr.bf16.gmra.mrb[28].mxu1 %v5380_v54  ;;  %v5487_v54 = vld [vmem:[%s5988_s1 + $0x118] sm:$0xff]  }
  0xaf   : > { %4871 = vmatmul.mubr.bf16.gmra.mrb[12].mxu0 %v5382_v56  ;;  %4666 = vmatprep.mubr.bf16.mxu1 %v5384_v57  ;;  %v5445_v56 = vld [vmem:[%s5537_s22 + $0x108] sm:$0xff]   ;;  %v5447_v57 = vld [vmem:[%s5537_s22 + $0x38] sm:$0xff]  }
  0xb0   : > { %4874 = vmatprep.mubr.bf16.mxu0 %v5385_v58  ;;  %4903 = vmatpush3.bf16.msra.mxu0 %v5401_v55  ;;  %v5444_v55 = vld [vmem:[%s5537_s22 + $0x30] sm:$0xff]  }
  0xb1   : > { %4904 = vmatprep.subr.bf16.mxu0 %v5407_v59  ;;  %v5448_v58 = vld [vmem:[%s5537_s22 + $0x110] sm:$0xff]  }
  0xb4   : > { %4905 = vmatpush3.bf16.msra.mxu0 %v5407_v59  ;;  %v5488_v59 = vld [vmem:[%s5988_s1 + $0x120] sm:$0xff]  }
  0xb5   : > { %4938 = vmatprep.subr.bf16.mxu0 %v5786_v61 }
  0xb6   : > { %4667 = vmatmul.mubr.bf16.vlgmr.msra.gmra.mrb[0].mxu1 %v5386_v60  ;;  %v5489_v60 = vld [vmem:[%s5988_s1 + $0x128] sm:$0xff]  }
  0xb7   : > { %4875 = vmatmul.mubr.bf16.gmra.mrb[16].mxu0 %v5388_v62  ;;  %4699 = vmatpush3.bf16.msra.mxu1 %v5743_v37  ;;  %v5441_v37 = vld [vmem:[%s5988_s1 + $0x228] sm:$0xff]   ;;  %v5450_v62 = vld [vmem:[%s5537_s22 + $0x118] sm:$0xff]  }
  0xb8   : > { %4670 = vmatprep.mubr.bf16.mxu1 %v5390_v63  ;;  %4878 = vmatprep.mubr.bf16.mxu0 %v5391_v0  ;;  %v5452_v63 = vld [vmem:[%s5537_s22 + $0x48] sm:$0xff]   ;;  %v5453_v0 = vld [vmem:[%s5537_s22 + $0x130] sm:$0xff]  }
  0xb9   : > { %4700 = vmatprep.subr.bf16.mxu1 %v5393_v1 }
  0xbb   : > { %4701 = vmatpush3.bf16.msra.mxu1 %v5393_v1  ;;  %v5490_v1 = vld [vmem:[%s5988_s1 + $0x130] sm:$0xff]  }
  0xbc   : > { %4702 = vmatprep.subr.bf16.mxu1 %v5399_v2 }
  0xbe   : > { %4671 = vmatmul.mubr.bf16.gmra.mrb[4].mxu1 %v5392_v3  ;;  %v5454_v3 = vld [vmem:[%s5537_s22 + $0x50] sm:$0xff]  }
  0xbf   : > { %4879 = vmatmul.mubr.bf16.gmra.mrb[20].mxu0 %v5394_v4  ;;  %4674 = vmatprep.mubr.bf16.mxu1 %v5396_v5  ;;  %v5455_v4 = vld [vmem:[%s5537_s22 + $0x138] sm:$0xff]  }
  0xc0   : > { %4882 = vmatprep.mubr.bf16.mxu0 %v5397_v6  ;;  %4703 = vmatpush3.bf16.msra.mxu1 %v5399_v2  ;;  %v5491_v2 = vld [vmem:[%s5988_s1 + $0x138] sm:$0xff]   ;;  %v5457_v6 = vld [vmem:[%s5537_s22 + $0x140] sm:$0xff]  }
  0xc1   : > { %4704 = vmatprep.subr.bf16.mxu1 %v5405_v7  ;;  %v5456_v5 = vld [vmem:[%s5537_s22 + $0x58] sm:$0xff]  }
  0xc4   : > { %4705 = vmatpush3.bf16.msra.mxu1 %v5405_v7  ;;  %v5458_v7 = vld [vmem:[%s5537_s22 + $0x60] sm:$0xff]  }
  0xc5   : > { %4706 = vmatprep.subr.bf16.mxu1 %v5411_v9 }
  0xc6   : > { %4675 = vmatmul.mubr.bf16.gmra.mrb[8].mxu1 %v5398_v8  ;;  %v5459_v8 = vld [vmem:[%s5537_s22 + $0x148] sm:$0xff]  }
  0xc7   : > { %4883 = vmatmul.mubr.bf16.gmra.mrb[24].mxu0 %v5400_v10  ;;  %4678 = vmatprep.mubr.bf16.mxu1 %v5402_v11  ;;  %v5461_v10 = vld [vmem:[%s5537_s22 + $0x150] sm:$0xff]  }
  0xc8   : > { %4886 = vmatprep.mubr.bf16.mxu0 %v5403_v12  ;;  %4707 = vmatpush3.bf16.msra.mxu1 %v5411_v9  ;;  %v5460_v9 = vld [vmem:[%s5537_s22 + $0x68] sm:$0xff]   ;;  %v5462_v11 = vld [vmem:[%s5537_s22 + $0x70] sm:$0xff]   ;;  %v5463_v12 = vld [vmem:[%s5537_s22 + $0x158] sm:$0xff]  }
  0xc9   : > { %4708 = vmatprep.subr.bf16.mxu1 %v5417_v13 }
  0xcc   : > { %4709 = vmatpush3.bf16.msra.mxu1 %v5417_v13  ;;  %v5464_v13 = vld [vmem:[%s5537_s22 + $0x78] sm:$0xff]  }
  0xcd   : > { %4710 = vmatprep.subr.bf16.mxu1 %v5423_v15 }
  0xce   : > { %4679 = vmatmul.mubr.bf16.gmra.mrb[12].mxu1 %v5404_v14  ;;  %v5465_v14 = vld [vmem:[%s5537_s22 + $0x160] sm:$0xff]  }
  0xcf   : > { %4887 = vmatmul.mubr.bf16.gmra.mrb[28].mxu0 %v5406_v16  ;;  %4682 = vmatprep.mubr.bf16.mxu1 %v5408_v17  ;;  %v5467_v16 = vld [vmem:[%s5537_s22 + $0x168] sm:$0xff]   ;;  %v5468_v17 = vld [vmem:[%s5537_s22 + $0xd8] sm:$0xff]  }
  0xd0   : > { %4906 = vmatprep.mubr.bf16.mxu0 %v5409_v18  ;;  %4711 = vmatpush3.bf16.msra.mxu1 %v5423_v15  ;;  %v5466_v15 = vld [vmem:[%s5537_s22 + $0x80] sm:$0xff]   ;;  %v5469_v18 = vld [vmem:[%s5537_s22 + $0x170] sm:$0xff]  }
  0xd1   : > { %4712 = vmatprep.subr.bf16.mxu1 %v5429_v19 }
  0xd4   : > { %4713 = vmatpush3.bf16.msra.mxu1 %v5429_v19  ;;  %v5470_v19 = vld [vmem:[%s5537_s22 + $0xe0] sm:$0xff]  }
  0xd5   : > { %4986 = vmatprep.subr.bf16.mxu1 %v5484_v25 }
  0xd6   : > { %4683 = vmatmul.mubr.bf16.gmra.mrb[16].mxu1 %v5410_v20  ;;  %v5471_v20 = vld [vmem:[%s5537_s22 + $0x178] sm:$0xff]  }
  0xd7   : > { %4907 = vmatmul.mubr.bf16.vlgmr.msra.gmra.mrb[0].mxu0 %v5412_v21  ;;  %4686 = vmatprep.mubr.bf16.mxu1 %v5414_v22  ;;  %v5472_v21 = vld [vmem:[%s5537_s22 + $0xe8] sm:$0xff]   ;;  %v5473_v22 = vld [vmem:[%s5537_s22 + $0x180] sm:$0xff]  }
  0xd8   : > { %4939 = vmatpush3.bf16.msra.mxu0 %v5786_v61  ;;  %4910 = vmatprep.mubr.bf16.mxu0 %v5415_v23  ;;  %v5449_v61 = vld [vmem:[%s5537_s22 + $0x40] sm:$0xff]   ;;  %v5474_v23 = vld [vmem:[%s5537_s22 + $0xf0] sm:$0xff]  }
  0xd9   : > { %4940 = vmatprep.subr.bf16.mxu0 %v5419_v24 }
  0xdc   : > { %4941 = vmatpush3.bf16.msra.mxu0 %v5419_v24  ;;  %v5475_v24 = vld [vmem:[%s5537_s22 + $0x188] sm:$0xff]  }
  0xdd   : > { %4942 = vmatprep.subr.bf16.mxu0 %v5425_v27 }
  0xde   : > { %4687 = vmatmul.mubr.bf16.gmra.mrb[20].mxu1 %v5416_v26  ;;  %v5477_v26 = vld [vmem:[%s5537_s22 + $0x190] sm:$0xff]  }
  0xdf   : > { %4911 = vmatmul.mubr.bf16.gmra.mrb[4].mxu0 %v5418_v28  ;;  %4690 = vmatprep.mubr.bf16.mxu1 %v5420_v29  ;;  %v5479_v28 = vld [vmem:[%s5537_s22 + $0x198] sm:$0xff]   ;;  %v5480_v29 = vld [vmem:[%s5537_s22 + $0x108] sm:$0xff]  }
  0xe0   : > { %4914 = vmatprep.mubr.bf16.mxu0 %v5421_v30  ;;  %4943 = vmatpush3.bf16.msra.mxu0 %v5425_v27  ;;  %v5478_v27 = vld [vmem:[%s5537_s22 + $0x100] sm:$0xff]  }
  0xe1   : > { %4944 = vmatprep.subr.bf16.mxu0 %v5431_v31  ;;  %v5481_v30 = vld [vmem:[%s5537_s22 + $0x1a0] sm:$0xff]  }
  0xe4   : > { %4945 = vmatpush3.bf16.msra.mxu0 %v5431_v31  ;;  %v5482_v31 = vld [vmem:[%s5537_s22 + $0x110] sm:$0xff]  }
  0xe5   : > { %4946 = vmatprep.subr.bf16.mxu0 %v5436_v33 }
  0xe6   : > { %4691 = vmatmul.mubr.bf16.gmra.mrb[24].mxu1 %v5422_v32  ;;  %v5483_v32 = vld [vmem:[%s5537_s22 + $0x1a8] sm:$0xff]  }
  0xe7   : > { %4915 = vmatmul.mubr.bf16.gmra.mrb[8].mxu0 %v5424_v34  ;;  %4694 = vmatprep.mubr.bf16.mxu1 %v5426_v35 }
  0xe8   : > { %4918 = vmatprep.mubr.bf16.mxu0 %v5427_v36  ;;  %4947 = vmatpush3.bf16.msra.mxu0 %v5436_v33 }
  0xe9   : > { %4948 = vmatprep.subr.bf16.mxu0 %v5441_v37 }
  0xec   : > { %4949 = vmatpush3.bf16.msra.mxu0 %v5441_v37 }
  0xed   : > { %4950 = vmatprep.subr.bf16.mxu0 %v5446_v39 }
  0xee   : > { %4695 = vmatmul.mubr.bf16.gmra.mrb[28].mxu1 %v5428_v38 }
  0xef   : > { %4919 = vmatmul.mubr.bf16.gmra.mrb[12].mxu0 %v5430_v40  ;;  %4714 = vmatprep.mubr.bf16.mxu1 %v5432_v41 }
  0xf0   : > { %4922 = vmatprep.mubr.bf16.mxu0 %v5433_v42  ;;  %4951 = vmatpush3.bf16.msra.mxu0 %v5446_v39 }
  0xf1   : > { %4952 = vmatprep.subr.bf16.mxu0 %v5451_v43 }
  0xf4   : > { %4953 = vmatpush3.bf16.msra.mxu0 %v5451_v43 }
  0xf6   : > { %4715 = vmatmul.mubr.bf16.vlgmr.msra.gmra.mrb[0].mxu1 %v5434_v44 }
  0xf7   : > { %4923 = vmatmul.mubr.bf16.gmra.mrb[16].mxu0 %v5435_v45  ;;  %4994 = vmatpush3.bf16.msra.mxu1 %v5484_v25  ;;  %v5476_v25 = vld [vmem:[%s5537_s22 + $0xf8] sm:$0xff]  }
  0xf8   : > { %4718 = vmatprep.mubr.bf16.mxu1 %v5437_v46  ;;  %4926 = vmatprep.mubr.bf16.mxu0 %v5438_v47 }
  0xf9   : > { %4987 = vmatprep.subr.bf16.mxu1 %v5485_v48 }
  0xfb   : > { %4995 = vmatpush3.bf16.msra.mxu1 %v5485_v48 }
  0xfc   : > { %4988 = vmatprep.subr.bf16.mxu1 %v5486_v53 }
  0xfe   : > { %4719 = vmatmul.mubr.bf16.gmra.mrb[4].mxu1 %v5439_v49 }
  0xff   : > { %4927 = vmatmul.mubr.bf16.gmra.mrb[20].mxu0 %v5440_v50  ;;  %4722 = vmatprep.mubr.bf16.mxu1 %v5442_v51 }
 0x100   : > { %4930 = vmatprep.mubr.bf16.mxu0 %v5443_v52  ;;  %4996 = vmatpush3.bf16.msra.mxu1 %v5486_v53 }
 0x101   : > { %4989 = vmatprep.subr.bf16.mxu1 %v5487_v54 }
 0x104   : > { %4997 = vmatpush3.bf16.msra.mxu1 %v5487_v54 }
 0x105   : > { %4990 = vmatprep.subr.bf16.mxu1 %v5488_v59 }
 0x106   : > { %4723 = vmatmul.mubr.bf16.gmra.mrb[8].mxu1 %v5444_v55 }
 0x107   : > { %4931 = vmatmul.mubr.bf16.gmra.mrb[24].mxu0 %v5445_v56  ;;  %4726 = vmatprep.mubr.bf16.mxu1 %v5447_v57 }
 0x108   : > { %4934 = vmatprep.mubr.bf16.mxu0 %v5448_v58  ;;  %4998 = vmatpush3.bf16.msra.mxu1 %v5488_v59 }
 0x109   : > { %4991 = vmatprep.subr.bf16.mxu1 %v5489_v60 }
 0x10c   : > { %4999 = vmatpush3.bf16.msra.mxu1 %v5489_v60 }
 0x10d   : > { %4992 = vmatprep.subr.bf16.mxu1 %v5490_v1 }
 0x10e   : > { %4727 = vmatmul.mubr.bf16.gmra.mrb[12].mxu1 %v5449_v61 }
 0x10f   : > { %4935 = vmatmul.mubr.bf16.gmra.mrb[28].mxu0 %v5450_v62  ;;  %4730 = vmatprep.mubr.bf16.mxu1 %v5452_v63 }
 0x110   : > { %4954 = vmatprep.mubr.bf16.mxu0 %v5453_v0  ;;  %5000 = vmatpush3.bf16.msra.mxu1 %v5490_v1 }
 0x111   : > { %4993 = vmatprep.subr.bf16.mxu1 %v5491_v2 }
 0x114   : > { %5001 = vmatpush3.bf16.msra.mxu1 %v5491_v2 }
 0x116   : > { %4731 = vmatmul.mubr.bf16.gmra.mrb[16].mxu1 %v5454_v3 }
 0x117   : > { %4955 = vmatmul.mubr.bf16.vlgmr.msra.gmra.mrb[0].mxu0 %v5455_v4  ;;  %4734 = vmatprep.mubr.bf16.mxu1 %v5456_v5 }
 0x118   : > { %4958 = vmatprep.mubr.bf16.mxu0 %v5457_v6 }
 0x11e   : > { %4735 = vmatmul.mubr.bf16.gmra.mrb[20].mxu1 %v5458_v7 }
 0x11f   : > { %4959 = vmatmul.mubr.bf16.gmra.mrb[4].mxu0 %v5459_v8  ;;  %4738 = vmatprep.mubr.bf16.mxu1 %v5460_v9 }
 0x120   : > { %4962 = vmatprep.mubr.bf16.mxu0 %v5461_v10 }
 0x126   : > { %4739 = vmatmul.mubr.bf16.gmra.mrb[24].mxu1 %v5462_v11 }
 0x127   : > { %4963 = vmatmul.mubr.bf16.gmra.mrb[8].mxu0 %v5463_v12  ;;  %4742 = vmatprep.mubr.bf16.mxu1 %v5464_v13 }
 0x128   : > { %4966 = vmatprep.mubr.bf16.mxu0 %v5465_v14 }
 0x12e   : > { %4743 = vmatmul.mubr.bf16.gmra.mrb[28].mxu1 %v5466_v15 }
 0x12f   : > { %4967 = vmatmul.mubr.bf16.gmra.mrb[12].mxu0 %v5467_v16  ;;  %4778 = vmatprep.mubr.bf16.mxu1 %v5468_v17 }
 0x130   : > { %4970 = vmatprep.mubr.bf16.mxu0 %v5469_v18 }
 0x136   : > { %4779 = vmatmul.mubr.bf16.vlgmr.msra.gmra.mrb[16].mxu1 %v5470_v19 }
 0x137   : > { %4971 = vmatmul.mubr.bf16.gmra.mrb[16].mxu0 %v5471_v20  ;;  %4782 = vmatprep.mubr.bf16.mxu1 %v5472_v21 }
 0x138   : > { %4974 = vmatprep.mubr.bf16.mxu0 %v5473_v22 }
 0x13e   : > { %4783 = vmatmul.mubr.bf16.gmra.mrb[20].mxu1 %v5474_v23 }
 0x13f   : > { %4975 = vmatmul.mubr.bf16.gmra.mrb[20].mxu0 %v5475_v24  ;;  %4786 = vmatprep.mubr.bf16.mxu1 %v5476_v25 }
 0x140   : > { %4978 = vmatprep.mubr.bf16.mxu0 %v5477_v26 }
 0x146   : > { %4787 = vmatmul.mubr.bf16.gmra.mrb[24].mxu1 %v5478_v27 }
 0x147   : > { %4979 = vmatmul.mubr.bf16.gmra.mrb[24].mxu0 %v5479_v28  ;;  %4790 = vmatprep.mubr.bf16.mxu1 %v5480_v29 }
 0x148   : > { %4982 = vmatprep.mubr.bf16.mxu0 %v5481_v30 }
 0x14e   : > { %4791 = vmatmul.mubr.bf16.gmra.mrb[28].mxu1 %v5482_v31 }
 0x14f   : > { %4983 = vmatmul.mubr.bf16.gmra.mrb[28].mxu0 %v5483_v32 }
 0x1c9   : > { %v4716_v33 = vpop.f32.mrb[0].mxu1 }
 0x1ca   : > { %v1497_v34 = vpop.f32.mrb[1].mxu1 }
 0x1cb   : > { %v4717_v35 = vpop.f32.mrb[2].mxu1 }
 0x1cc   : > { %v1500_v36 = vpop.f32.mrb[3].mxu1 }
 0x1d1   : > { %v4720_v37 = vpop.f32.mrb[4].mxu1 }
 0x1d2   : > { %v1513_v38 = vpop.f32.mrb[5].mxu1 }
 0x1d3   : > { %v4721_v39 = vpop.f32.mrb[6].mxu1 }
 0x1d4   : > { %v1516_v40 = vpop.f32.mrb[7].mxu1 }
 0x1d9   : > { %v4724_v41 = vpop.f32.mrb[8].mxu1 }
 0x1da   : > { %v1529_v42 = vpop.f32.mrb[9].mxu1 }
 0x1db   : > { %v4725_v43 = vpop.f32.mrb[10].mxu1 }
 0x1dc   : > { %v1532_v44 = vpop.f32.mrb[11].mxu1 }
 0x1e1   : > { %v5934_v45 = vpop.f32.mrb[12].mxu1 }
 0x1e2   : > { %v5936_v46 = vpop.f32.mrb[13].mxu1 }
 0x1e3   : > { %v5938_v47 = vpop.f32.mrb[14].mxu1 }
 0x1e4   : > { %v5940_v48 = vpop.f32.mrb[15].mxu1 }
 0x1ea   : > { %v4956_v49 = vpop.f32.mrb[0].mxu0 }
 0x1eb   : > { %v5002_v50 = vadd.f32 %v4956_v49, %v4716_v33  ;;  %v3427_v51 = vpop.f32.mrb[1].mxu0 }
 0x1ec   : > { %v5003_v52 = vadd.f32 %v3427_v51, %v1497_v34  ;;  %v4957_v53 = vpop.f32.mrb[2].mxu0 }
 0x1ed   : > { %3588 = vst [vmem:[%s5532_s19 + $0x10] sm:$0xff] %v5002_v50  ;;  %v5004_v54 = vadd.f32 %v4957_v53, %v4717_v35  ;;  %v3430_v55 = vpop.f32.mrb[3].mxu0  ;;  %v3657_v60 = vmul.f32 %v5002_v50, %v5002_v50 }
 0x1ee   : > { %3586 = vst [vmem:[%s5532_s19] sm:$0xff] %v5003_v52  ;;  %v5005_v56 = vadd.f32 %v3430_v55, %v1500_v36  ;;  %v3655_v57 = vmul.f32 %v5003_v52, %v5003_v52 }
 0x1ef   : > { %3589 = vst [vmem:[%s5532_s19 + $0x18] sm:$0xff] %v5004_v54  ;;  %v3658_v2 = vmul.f32 %v5004_v54, %v5004_v54 }
 0x1f0   : > { %3587 = vst [vmem:[%s5532_s19 + $0x8] sm:$0xff] %v5005_v56  ;;  %v3618_v58 = vadd.f32 %v5005_v56, %v5003_v52  ;;  %v3656_v59 = vmul.f32 %v5005_v56, %v5005_v56 }
 0x1f2   : > { %v3619_v61 = vadd.f32 %v5002_v50, %v3618_v58  ;;  %v3687_v62 = vadd.f32 %v3656_v59, %v3655_v57  ;;  %v4960_v63 = vpop.f32.mrb[4].mxu0 }
 0x1f3   : > { %v5006_v0 = vadd.f32 %v4960_v63, %v4720_v37  ;;  %v3443_v1 = vpop.f32.mrb[5].mxu0 }
 0x1f4   : > { %v3688_v3 = vadd.f32 %v3687_v62, %v3657_v60  ;;  %v5007_v4 = vadd.f32 %v3443_v1, %v1513_v38  ;;  %v3620_v5 = vadd.f32 %v5004_v54, %v3619_v61  ;;  %v4961_v6 = vpop.f32.mrb[6].mxu0 }
 0x1f5   : > { %3592 = vst [vmem:[%s5532_s19 + $0x30] sm:$0xff] %v5006_v0  ;;  %v5008_v7 = vadd.f32 %v4961_v6, %v4721_v39  ;;  %v3446_v8 = vpop.f32.mrb[7].mxu0  ;;  %v3661_v16 = vmul.f32 %v5006_v0, %v5006_v0 }
 0x1f6   : > { %3590 = vst [vmem:[%s5532_s19 + $0x20] sm:$0xff] %v5007_v4  ;;  %v3621_v9 = vadd.f32 %v5007_v4, %v3620_v5  ;;  %v3659_v10 = vmul.f32 %v5007_v4, %v5007_v4  ;;  %v3689_v11 = vadd.f32 %v3688_v3, %v3658_v2  ;;  %v5009_v12 = vadd.f32 %v3446_v8, %v1516_v40 }
 0x1f7   : > { %3593 = vst [vmem:[%s5532_s19 + $0x38] sm:$0xff] %v5008_v7  ;;  %v3662_v22 = vmul.f32 %v5008_v7, %v5008_v7 }
 0x1f8   : > { %v3690_v13 = vadd.f32 %v3689_v11, %v3659_v10  ;;  %3591 = vst [vmem:[%s5532_s19 + $0x28] sm:$0xff] %v5009_v12  ;;  %v3622_v14 = vadd.f32 %v5009_v12, %v3621_v9  ;;  %v3660_v15 = vmul.f32 %v5009_v12, %v5009_v12 }
 0x1fa   : > { %v3623_v17 = vadd.f32 %v5006_v0, %v3622_v14  ;;  %v3691_v18 = vadd.f32 %v3690_v13, %v3660_v15  ;;  %v4964_v19 = vpop.f32.mrb[8].mxu0 }
 0x1fb   : > { %v5010_v20 = vadd.f32 %v4964_v19, %v4724_v41  ;;  %v3459_v21 = vpop.f32.mrb[9].mxu0 }
 0x1fc   : > { %v3692_v23 = vadd.f32 %v3691_v18, %v3661_v16  ;;  %v5011_v24 = vadd.f32 %v3459_v21, %v1529_v42  ;;  %v3624_v25 = vadd.f32 %v5008_v7, %v3623_v17  ;;  %v4965_v26 = vpop.f32.mrb[10].mxu0 }
 0x1fd   : > { %3596 = vst [vmem:[%s5532_s19 + $0x50] sm:$0xff] %v5010_v20  ;;  %v5012_v27 = vadd.f32 %v4965_v26, %v4725_v43  ;;  %v3462_v28 = vpop.f32.mrb[11].mxu0  ;;  %v3665_v36 = vmul.f32 %v5010_v20, %v5010_v20 }
 0x1fe   : > { %3594 = vst [vmem:[%s5532_s19 + $0x40] sm:$0xff] %v5011_v24  ;;  %v3625_v29 = vadd.f32 %v5011_v24, %v3624_v25  ;;  %v3663_v30 = vmul.f32 %v5011_v24, %v5011_v24  ;;  %v3693_v31 = vadd.f32 %v3692_v23, %v3662_v22  ;;  %v5013_v32 = vadd.f32 %v3462_v28, %v1532_v44 }
 0x1ff   : > { %3597 = vst [vmem:[%s5532_s19 + $0x58] sm:$0xff] %v5012_v27  ;;  %v3666_v42 = vmul.f32 %v5012_v27, %v5012_v27 }
 0x200   : > { %v3694_v33 = vadd.f32 %v3693_v31, %v3663_v30  ;;  %3595 = vst [vmem:[%s5532_s19 + $0x48] sm:$0xff] %v5013_v32  ;;  %v3626_v34 = vadd.f32 %v5013_v32, %v3625_v29  ;;  %v3664_v35 = vmul.f32 %v5013_v32, %v5013_v32 }
 0x202   : > { %v3627_v37 = vadd.f32 %v5010_v20, %v3626_v34  ;;  %v3695_v38 = vadd.f32 %v3694_v33, %v3664_v35  ;;  %v4968_v39 = vpop.f32.mrb[12].mxu0 }
 0x203   : > { %v5014_v40 = vadd.f32 %v4968_v39, %v5934_v45  ;;  %v3475_v41 = vpop.f32.mrb[13].mxu0 }
 0x204   : > { %v3696_v43 = vadd.f32 %v3695_v38, %v3665_v36  ;;  %v5015_v44 = vadd.f32 %v3475_v41, %v5936_v46  ;;  %v3628_v49 = vadd.f32 %v5012_v27, %v3627_v37  ;;  %v4969_v50 = vpop.f32.mrb[14].mxu0 }
 0x205   : > { %3600 = vst [vmem:[%s5532_s19 + $0x70] sm:$0xff] %v5014_v40  ;;  %v5016_v51 = vadd.f32 %v4969_v50, %v5938_v47  ;;  %v3478_v52 = vpop.f32.mrb[15].mxu0  ;;  %v3669_v46 = vmul.f32 %v5014_v40, %v5014_v40 }
 0x206   : > { %3598 = vst [vmem:[%s5532_s19 + $0x60] sm:$0xff] %v5015_v44  ;;  %v3629_v53 = vadd.f32 %v5015_v44, %v3628_v49  ;;  %v3667_v54 = vmul.f32 %v5015_v44, %v5015_v44  ;;  %v3697_v55 = vadd.f32 %v3696_v43, %v3666_v42  ;;  %v5017_v56 = vadd.f32 %v3478_v52, %v5940_v48 }
 0x207   : > { %3601 = vst [vmem:[%s5532_s19 + $0x78] sm:$0xff] %v5016_v51  ;;  %v3670_v2 = vmul.f32 %v5016_v51, %v5016_v51 }
 0x208   : > { %v3698_v45 = vadd.f32 %v3697_v55, %v3667_v54  ;;  %3599 = vst [vmem:[%s5532_s19 + $0x68] sm:$0xff] %v5017_v56  ;;  %v3630_v57 = vadd.f32 %v5017_v56, %v3629_v53  ;;  %v3668_v58 = vmul.f32 %v5017_v56, %v5017_v56 }
 0x209   : > { %v4780_v59 = vpop.f32.mrb[16].mxu1 }
 0x20a   : > { %v3631_v60 = vadd.f32 %v5014_v40, %v3630_v57  ;;  %v3699_v61 = vadd.f32 %v3698_v45, %v3668_v58  ;;  %v4972_v62 = vpop.f32.mrb[16].mxu0  ;;  %v1947_v47 = vpop.f32.mrb[17].mxu1 }
 0x20b   : > { %v5018_v63 = vadd.f32 %v4972_v62, %v4780_v59  ;;  %v3491_v0 = vpop.f32.mrb[17].mxu0  ;;  %v4781_v1 = vpop.f32.mrb[18].mxu1 }
 0x20c   : > { %v3700_v48 = vadd.f32 %v3699_v61, %v3669_v46  ;;  %v5019_v3 = vadd.f32 %v3491_v0, %v1947_v47  ;;  %v3632_v4 = vadd.f32 %v5016_v51, %v3631_v60  ;;  %v4973_v5 = vpop.f32.mrb[18].mxu0  ;;  %v1950_v6 = vpop.f32.mrb[19].mxu1 }
 0x20d   : > { %3604 = vst [vmem:[%s5532_s19 + $0x90] sm:$0xff] %v5018_v63  ;;  %v5020_v7 = vadd.f32 %v4973_v5, %v4781_v1  ;;  %v3494_v8 = vpop.f32.mrb[19].mxu0  ;;  %v3673_v17 = vmul.f32 %v5018_v63, %v5018_v63 }
 0x20e   : > { %3602 = vst [vmem:[%s5532_s19 + $0x80] sm:$0xff] %v5019_v3  ;;  %v3633_v9 = vadd.f32 %v5019_v3, %v3632_v4  ;;  %v3671_v10 = vmul.f32 %v5019_v3, %v5019_v3  ;;  %v3701_v11 = vadd.f32 %v3700_v48, %v3670_v2  ;;  %v5021_v12 = vadd.f32 %v3494_v8, %v1950_v6 }
 0x20f   : > { %3605 = vst [vmem:[%s5532_s19 + $0x98] sm:$0xff] %v5020_v7  ;;  %v3674_v25 = vmul.f32 %v5020_v7, %v5020_v7 }
 0x210   : > { %v3702_v13 = vadd.f32 %v3701_v11, %v3671_v10  ;;  %3603 = vst [vmem:[%s5532_s19 + $0x88] sm:$0xff] %v5021_v12  ;;  %v3634_v14 = vadd.f32 %v5021_v12, %v3633_v9  ;;  %v3672_v15 = vmul.f32 %v5021_v12, %v5021_v12 }
 0x211   : > { %v4784_v16 = vpop.f32.mrb[20].mxu1 }
 0x212   : > { %v3635_v18 = vadd.f32 %v5018_v63, %v3634_v14  ;;  %v3703_v19 = vadd.f32 %v3702_v13, %v3672_v15  ;;  %v4976_v20 = vpop.f32.mrb[20].mxu0  ;;  %v1963_v21 = vpop.f32.mrb[21].mxu1 }
 0x213   : > { %v5022_v22 = vadd.f32 %v4976_v20, %v4784_v16  ;;  %v3507_v23 = vpop.f32.mrb[21].mxu0  ;;  %v4785_v24 = vpop.f32.mrb[22].mxu1 }
 0x214   : > { %v3704_v26 = vadd.f32 %v3703_v19, %v3673_v17  ;;  %v5023_v27 = vadd.f32 %v3507_v23, %v1963_v21  ;;  %v3636_v28 = vadd.f32 %v5020_v7, %v3635_v18  ;;  %v4977_v29 = vpop.f32.mrb[22].mxu0  ;;  %v1966_v30 = vpop.f32.mrb[23].mxu1 }
 0x215   : > { %3608 = vst [vmem:[%s5532_s19 + $0xb0] sm:$0xff] %v5022_v22  ;;  %v5024_v31 = vadd.f32 %v4977_v29, %v4785_v24  ;;  %v3510_v32 = vpop.f32.mrb[23].mxu0  ;;  %v3677_v41 = vmul.f32 %v5022_v22, %v5022_v22 }
 0x216   : > { %3606 = vst [vmem:[%s5532_s19 + $0xa0] sm:$0xff] %v5023_v27  ;;  %v3637_v33 = vadd.f32 %v5023_v27, %v3636_v28  ;;  %v3675_v34 = vmul.f32 %v5023_v27, %v5023_v27  ;;  %v3705_v35 = vadd.f32 %v3704_v26, %v3674_v25  ;;  %v5025_v36 = vadd.f32 %v3510_v32, %v1966_v30 }
 0x217   : > { %3609 = vst [vmem:[%s5532_s19 + $0xb8] sm:$0xff] %v5024_v31  ;;  %v3678_v53 = vmul.f32 %v5024_v31, %v5024_v31 }
 0x218   : > { %v3706_v37 = vadd.f32 %v3705_v35, %v3675_v34  ;;  %3607 = vst [vmem:[%s5532_s19 + $0xa8] sm:$0xff] %v5025_v36  ;;  %v3638_v38 = vadd.f32 %v5025_v36, %v3637_v33  ;;  %v3676_v39 = vmul.f32 %v5025_v36, %v5025_v36 }
 0x219   : > { %v4788_v40 = vpop.f32.mrb[24].mxu1 }
 0x21a   : > { %v3639_v42 = vadd.f32 %v5022_v22, %v3638_v38  ;;  %v3707_v43 = vadd.f32 %v3706_v37, %v3676_v39  ;;  %v4980_v44 = vpop.f32.mrb[24].mxu0  ;;  %v1979_v49 = vpop.f32.mrb[25].mxu1 }
 0x21b   : > { %v5026_v50 = vadd.f32 %v4980_v44, %v4788_v40  ;;  %v3523_v51 = vpop.f32.mrb[25].mxu0  ;;  %v4789_v52 = vpop.f32.mrb[26].mxu1 }
 0x21c   : > { %v3708_v54 = vadd.f32 %v3707_v43, %v3677_v41  ;;  %v5027_v55 = vadd.f32 %v3523_v51, %v1979_v49  ;;  %v3640_v56 = vadd.f32 %v5024_v31, %v3639_v42  ;;  %v4981_v45 = vpop.f32.mrb[26].mxu0  ;;  %v1982_v57 = vpop.f32.mrb[27].mxu1  ;;  %v3724_v43 = vld [vmem:[%s5990_s3] sm:$0x3] }
 0x21d   : > { %3612 = vst [vmem:[%s5532_s19 + $0xd0] sm:$0xff] %v5026_v50  ;;  %v5028_v58 = vadd.f32 %v4981_v45, %v4789_v52  ;;  %v3526_v59 = vpop.f32.mrb[27].mxu0  ;;  %v3681_v2 = vmul.f32 %v5026_v50, %v5026_v50 }
 0x21e   : > { %3610 = vst [vmem:[%s5532_s19 + $0xc0] sm:$0xff] %v5027_v55  ;;  %v3641_v46 = vadd.f32 %v5027_v55, %v3640_v56  ;;  %v3679_v60 = vmul.f32 %v5027_v55, %v5027_v55  ;;  %v3709_v61 = vadd.f32 %v3708_v54, %v3678_v53  ;;  %v5029_v62 = vadd.f32 %v3526_v59, %v1982_v57 }
 0x21f   : > { %3613 = vst [vmem:[%s5532_s19 + $0xd8] sm:$0xff] %v5028_v58  ;;  %v3682_v9 = vmul.f32 %v5028_v58, %v5028_v58 }
 0x220   : > { %v3710_v47 = vadd.f32 %v3709_v61, %v3679_v60  ;;  %3611 = vst [vmem:[%s5532_s19 + $0xc8] sm:$0xff] %v5029_v62  ;;  %v3642_v63 = vadd.f32 %v5029_v62, %v3641_v46  ;;  %v3680_v0 = vmul.f32 %v5029_v62, %v5029_v62 }
 0x221   : > { %v4792_v1 = vpop.f32.mrb[28].mxu1 }
 0x222   : > { %v3643_v48 = vadd.f32 %v5026_v50, %v3642_v63  ;;  %v3711_v3 = vadd.f32 %v3710_v47, %v3680_v0  ;;  %v4984_v4 = vpop.f32.mrb[28].mxu0  ;;  %v1995_v5 = vpop.f32.mrb[29].mxu1 }
 0x223   : > { %v5030_v6 = vadd.f32 %v4984_v4, %v4792_v1  ;;  %v3539_v7 = vpop.f32.mrb[29].mxu0  ;;  %v4793_v8 = vpop.f32.mrb[30].mxu1 }
 0x224   : > { %v3712_v10 = vadd.f32 %v3711_v3, %v3681_v2  ;;  %v5031_v11 = vadd.f32 %v3539_v7, %v1995_v5  ;;  %v3644_v12 = vadd.f32 %v5028_v58, %v3643_v48  ;;  %v4985_v13 = vpop.f32.mrb[30].mxu0  ;;  %v1998_v14 = vpop.f32.mrb[31].mxu1 }
 0x225   : > { %3616 = vst [vmem:[%s5532_s19 + $0xf0] sm:$0xff] %v5030_v6  ;;  %v5032_v15 = vadd.f32 %v4985_v13, %v4793_v8  ;;  %v3542_v16 = vpop.f32.mrb[31].mxu0  ;;  %v3685_v24 = vmul.f32 %v5030_v6, %v5030_v6 }
 0x226   : > { %3614 = vst [vmem:[%s5532_s19 + $0xe0] sm:$0xff] %v5031_v11  ;;  %v3645_v17 = vadd.f32 %v5031_v11, %v3644_v12  ;;  %v3683_v18 = vmul.f32 %v5031_v11, %v5031_v11  ;;  %v3713_v19 = vadd.f32 %v3712_v10, %v3682_v9  ;;  %v5033_v20 = vadd.f32 %v3542_v16, %v1998_v14 }
 0x227   : > { %3617 = vst [vmem:[%s5532_s19 + $0xf8] sm:$0xff] %v5032_v15  ;;  %v3686_v27 = vmul.f32 %v5032_v15, %v5032_v15 }
 0x228   : > { %v3714_v21 = vadd.f32 %v3713_v19, %v3683_v18  ;;  %3615 = vst [vmem:[%s5532_s19 + $0xe8] sm:$0xff] %v5033_v20  ;;  %v3646_v22 = vadd.f32 %v5033_v20, %v3645_v17  ;;  %v3684_v23 = vmul.f32 %v5033_v20, %v5033_v20 }
 0x22a   : > { %v3647_v25 = vadd.f32 %v5030_v6, %v3646_v22  ;;  %v3715_v26 = vadd.f32 %v3714_v21, %v3684_v23 }
 0x22c   : > { %v3648_v28 = vadd.f32 %v5032_v15, %v3647_v25  ;;  %v3716_v29 = vadd.f32 %v3715_v26, %v3685_v24 }
 0x22e   : > { %v3649_v30 = vrot.slane %v3648_v28, 4  ;;  %v3717_v31 = vadd.f32 %v3716_v29, %v3686_v27 }
 0x230   : > { %v3650_v32 = vadd.f32 %v3649_v30, %v3648_v28  ;;  %v3718_v33 = vrot.slane %v3717_v31, 4 }
 0x232   : > { %v3651_v34 = vrot.slane %v3650_v32, 2  ;;  %v3719_v35 = vadd.f32 %v3718_v33, %v3717_v31 }
 0x234   : > { %v3652_v36 = vadd.f32 %v3651_v34, %v3650_v32  ;;  %v3720_v37 = vrot.slane %v3719_v35, 2 }
 0x236   : > { %v3653_v38 = vrot.slane %v3652_v36, 1  ;;  %v3721_v39 = vadd.f32 %v3720_v37, %v3719_v35 }
 0x238   : > { %v3722_v40 = vrot.slane %v3721_v39, 1  ;;  %v3654_v41 = vadd.f32 %v3653_v38, %v3652_v36 }
 0x23a   : > { %v3723_v42 = vadd.f32 %v3722_v40, %v3721_v39 }
 0x23c   : > { %v3726_v44 = vsel %vm3725_vm0, %v3654_v41, %v3723_v42 }
 0x23d   : > { %v3727_v49 = vadd.f32 %v3726_v44, %v3724_v43 }
 0x23f   : > { %3728 = vst [vmem:[%s5990_s3] sm:$0x3] %v3727_v49 }
 0x240 PF: > { %s14_s12 = sadd.s32 1, %s5498_s12  }
 0x241   : > { %p11_p5 = scmp.ge.s32.totalorder %s14_s12, 4  }
 0x243   :  { %13 = sbr.rel (!%p11_p5) target bundleno = 1 (0x1), region = 80 }

// kernel: residual_block.7
= control target key start
LH: loop header
LB: loop body
LE: loop exit
PB: predicated region body
PF: predicated region fallthrough
CT: control target
= control target key end

     0   :  { %s585_s15 = smov 0   ;;  %s786_s0 = inlined_call_operand.vmem [shape: f32[512,128], index: 0, kind: input, shape index: {}]   ;;  %s787_s1 = inlined_call_operand.vmem [shape: f32[512,128], index: 1, kind: input, shape index: {}]   ;;  %s788_s2 = inlined_call_operand.vmem [shape: f32[1,128], index: 2, kind: input, shape index: {}]   ;;  %s789_s3 = inlined_call_operand.vmem [shape: f32[1,128], index: 3, kind: input, shape index: {}]   ;;  %s790_s4 = inlined_call_operand.vmem [shape: f32[512,128], index: 4, kind: output, shape index: {}]  }
   0x1 LB: > { %s529_s16 = sadd.s32 4294967295, %s558_s15   ;;  %p533_p0 = scmp.ge.s32.totalorder %s558_s15, 1  ;;  %s558_s15 = sphi %s585_s15, %s14_s15  }
   0x2   : > { %p174_p1 = scmp.lt.s32.totalorder %s558_s15, 3 }
   0x4   : > { %p175_p2 = pnand %p533_p0, %p174_p1 }
   0x5   : > { %s534_s17 = sshll.u32 (!%p175_p2), %s529_s16, 5  ;;  %v598_v0 = vld [vmem:[%s788_s2] ss:$0 sm:$0xff] (!%p175_p2) }
   0x6   : > { %178 = sbr.rel (%p175_p2) target bundleno = 55 (0x37), region = 36  ;;  %p206_p3 = scmp.lt.s32.totalorder (!%p175_p2), %s534_s17, 63  ;;  %v616_v2 = vld [vmem:[%s789_s3] ss:$0 sm:$0xff] (!%p175_p2) }
   0xd   : > { %s792_s17 = smov (!%p206_p3, %s534_s17), 63 }
   0xe   : > { %s593_s18 = sshll.u32 %s792_s17, 3 }
   0xf   : > { %s604_s23 = scalar_lea.vmem %s786_s0, %s593_s18  ;;  %s610_s26 = scalar_lea.vmem %s787_s1, %s593_s18 }
  0x10   : > { %v223_v1 = vld [vmem:[%s604_s23] sm:$0xff]  ;;  %v224_v3 = vld [vmem:[%s604_s23 + $0x8] sm:$0xff]  ;;  %v225_v7 = vld [vmem:[%s604_s23 + $0x10] sm:$0xff]  ;;  %s646_s5 = scalar_lea.vmem %s790_s4, %s593_s18 }
  0x11   : > { %v262_v4 = vmul.f32 %v598_v0, %v223_v1  ;;  %v333_v5 = vld [vmem:[%s610_s26] sm:$0xff]  ;;  %v263_v6 = vmul.f32 %v598_v0, %v224_v3  ;;  %v334_v8 = vld [vmem:[%s610_s26 + $0x8] sm:$0xff]  ;;  %v264_v9 = vmul.f32 %v598_v0, %v225_v7  ;;  %v226_v10 = vld [vmem:[%s604_s23 + $0x18] sm:$0xff] }
  0x12   : > { %v227_v11 = vld [vmem:[%s604_s23 + $0x20] sm:$0xff]  ;;  %v335_v14 = vld [vmem:[%s610_s26 + $0x10] sm:$0xff]  ;;  %v265_v15 = vmul.f32 %v598_v0, %v226_v10  ;;  %v336_v16 = vld [vmem:[%s610_s26 + $0x18] sm:$0xff] }
  0x13   : > { %v301_v12 = vadd.f32 %v616_v2, %v262_v4  ;;  %v302_v13 = vadd.f32 %v616_v2, %v263_v6  ;;  %v266_v17 = vmul.f32 %v598_v0, %v227_v11  ;;  %v228_v18 = vld [vmem:[%s604_s23 + $0x28] sm:$0xff]  ;;  %v303_v19 = vadd.f32 %v616_v2, %v264_v9  ;;  %v337_v20 = vld [vmem:[%s610_s26 + $0x20] sm:$0xff]  ;;  %v229_v22 = vld [vmem:[%s604_s23 + $0x30] sm:$0xff] }
  0x14   : > { %v267_v21 = vmul.f32 %v598_v0, %v228_v18  ;;  %v230_v23 = vld [vmem:[%s604_s23 + $0x38] sm:$0xff]  ;;  %v304_v26 = vadd.f32 %v616_v2, %v265_v15  ;;  %v338_v28 = vld [vmem:[%s610_s26 + $0x28] sm:$0xff]  ;;  %v268_v31 = vmul.f32 %v598_v0, %v229_v22  ;;  %v231_v33 = vld [vmem:[%s604_s23 + $0x40] sm:$0xff] }
  0x15   : > { %v365_v24 = vadd.f32 %v333_v5, %v301_v12  ;;  %v366_v25 = vadd.f32 %v334_v8, %v302_v13  ;;  %v305_v27 = vadd.f32 %v616_v2, %v266_v17  ;;  %v367_v29 = vadd.f32 %v335_v14, %v303_v19  ;;  %v232_v34 = vld [vmem:[%s604_s23 + $0x48] sm:$0xff]  ;;  %v339_v39 = vld [vmem:[%s610_s26 + $0x30] sm:$0xff]  ;;  %v340_v40 = vld [vmem:[%s610_s26 + $0x38] sm:$0xff] }
  0x16   : > { %v306_v30 = vadd.f32 %v616_v2, %v267_v21  ;;  %v269_v32 = vmul.f32 %v598_v0, %v230_v23  ;;  %v368_v37 = vadd.f32 %v336_v16, %v304_v26  ;;  %v233_v41 = vld [vmem:[%s604_s23 + $0x50] sm:$0xff]  ;;  %v307_v44 = vadd.f32 %v616_v2, %v268_v31  ;;  %v234_v46 = vld [vmem:[%s604_s23 + $0x58] sm:$0xff]  ;;  %v235_v47 = vld [vmem:[%s604_s23 + $0x60] sm:$0xff] }
  0x17   : > { %v397_v35 = vmax.f32 %v365_v24, 0.0  ;;  %v398_v36 = vmax.f32 %v366_v25, 0.0  ;;  %v369_v38 = vadd.f32 %v337_v20, %v305_v27  ;;  %v399_v42 = vmax.f32 %v367_v29, 0.0  ;;  %v236_v52 = vld [vmem:[%s604_s23 + $0x68] sm:$0xff]  ;;  %v341_v56 = vld [vmem:[%s610_s26 + $0x40] sm:$0xff]  ;;  %v343_v61 = vld [vmem:[%s610_s26 + $0x50] sm:$0xff] }
  0x18   : > { %v370_v43 = vadd.f32 %v338_v28, %v306_v30  ;;  %v308_v45 = vadd.f32 %v616_v2, %v269_v32  ;;  %v400_v48 = vmax.f32 %v368_v37, 0.0  ;;  %v270_v50 = vmul.f32 %v598_v0, %v231_v33  ;;  %v342_v57 = vld [vmem:[%s610_s26 + $0x48] sm:$0xff]  ;;  %v237_v1 = vld [vmem:[%s604_s23 + $0x70] sm:$0xff]  ;;  %v238_v3 = vld [vmem:[%s604_s23 + $0x78] sm:$0xff] }
  0x19   : > { %429 = vst [vmem:[%s646_s5] sm:$0xff] %v397_v35  ;;  %430 = vst [vmem:[%s646_s5 + $0x8] sm:$0xff] %v398_v36  ;;  %v401_v49 = vmax.f32 %v369_v38, 0.0  ;;  %v271_v51 = vmul.f32 %v598_v0, %v232_v34  ;;  %v371_v54 = vadd.f32 %v339_v39, %v307_v44  ;;  %v272_v58 = vmul.f32 %v598_v0, %v233_v41  ;;  %v344_v7 = vld [vmem:[%s610_s26 + $0x58] sm:$0xff]  ;;  %v345_v8 = vld [vmem:[%s610_s26 + $0x60] sm:$0xff] }
  0x1a   : > { %431 = vst [vmem:[%s646_s5 + $0x10] sm:$0xff] %v399_v42  ;;  %v402_v53 = vmax.f32 %v370_v43, 0.0  ;;  %v372_v55 = vadd.f32 %v340_v40, %v308_v45  ;;  %432 = vst [vmem:[%s646_s5 + $0x18] sm:$0xff] %v400_v48  ;;  %v309_v59 = vadd.f32 %v616_v2, %v270_v50  ;;  %v273_v62 = vmul.f32 %v598_v0, %v234_v46  ;;  %v346_v14 = vld [vmem:[%s610_s26 + $0x68] sm:$0xff]  ;;  %v239_v19 = vld [vmem:[%s604_s23 + $0x80] sm:$0xff] }
  0x1b   : > { %433 = vst [vmem:[%s646_s5 + $0x20] sm:$0xff] %v401_v49  ;;  %v310_v60 = vadd.f32 %v616_v2, %v271_v51  ;;  %v274_v63 = vmul.f32 %v598_v0, %v235_v47  ;;  %v403_v4 = vmax.f32 %v371_v54, 0.0  ;;  %v311_v6 = vadd.f32 %v616_v2, %v272_v58  ;;  %v240_v20 = vld [vmem:[%s604_s23 + $0x88] sm:$0xff]  ;;  %v347_v25 = vld [vmem:[%s610_s26 + $0x70] sm:$0xff]  ;;  %v348_v26 = vld [vmem:[%s610_s26 + $0x78] sm:$0xff] }
  0x1c   : > { %434 = vst [vmem:[%s646_s5 + $0x28] sm:$0xff] %v402_v53  ;;  %v404_v5 = vmax.f32 %v372_v55, 0.0  ;;  %v275_v9 = vmul.f32 %v598_v0, %v236_v52  ;;  %v373_v10 = vadd.f32 %v341_v56, %v309_v59  ;;  %v312_v12 = vadd.f32 %v616_v2, %v273_v62  ;;  %v241_v27 = vld [vmem:[%s604_s23 + $0x90] sm:$0xff]  ;;  %v242_v32 = vld [vmem:[%s604_s23 + $0x98] sm:$0xff]  ;;  %v243_v33 = vld [vmem:[%s604_s23 + $0xa0] sm:$0xff] }
  0x1d   : > { %v374_v11 = vadd.f32 %v342_v57, %v310_v60  ;;  %v313_v13 = vadd.f32 %v616_v2, %v274_v63  ;;  %435 = vst [vmem:[%s646_s5 + $0x30] sm:$0xff] %v403_v4  ;;  %v375_v15 = vadd.f32 %v343_v61, %v311_v6  ;;  %v276_v17 = vmul.f32 %v598_v0, %v237_v1  ;;  %v244_v38 = vld [vmem:[%s604_s23 + $0xa8] sm:$0xff]  ;;  %v349_v42 = vld [vmem:[%s610_s26 + $0x80] sm:$0xff]  ;;  %v351_v47 = vld [vmem:[%s610_s26 + $0x90] sm:$0xff] }
  0x1e   : > { %436 = vst [vmem:[%s646_s5 + $0x38] sm:$0xff] %v404_v5  ;;  %v314_v16 = vadd.f32 %v616_v2, %v275_v9  ;;  %v277_v18 = vmul.f32 %v598_v0, %v238_v3  ;;  %v405_v21 = vmax.f32 %v373_v10, 0.0  ;;  %v376_v23 = vadd.f32 %v344_v7, %v312_v12  ;;  %v350_v43 = vld [vmem:[%s610_s26 + $0x88] sm:$0xff]  ;;  %v245_v50 = vld [vmem:[%s604_s23 + $0xb0] sm:$0xff]  ;;  %v246_v51 = vld [vmem:[%s604_s23 + $0xb8] sm:$0xff] }
  0x1f   : > { %v406_v22 = vmax.f32 %v374_v11, 0.0  ;;  %v377_v24 = vadd.f32 %v345_v8, %v313_v13  ;;  %v407_v28 = vmax.f32 %v375_v15, 0.0  ;;  %v315_v30 = vadd.f32 %v616_v2, %v276_v17  ;;  %v352_v55 = vld [vmem:[%s610_s26 + $0x98] sm:$0xff]  ;;  %v353_v56 = vld [vmem:[%s610_s26 + $0xa0] sm:$0xff]  ;;  %v354_v62 = vld [vmem:[%s610_s26 + $0xa8] sm:$0xff] }
  0x20   : > { %v378_v29 = vadd.f32 %v346_v14, %v314_v16  ;;  %v316_v31 = vadd.f32 %v616_v2, %v277_v18  ;;  %437 = vst [vmem:[%s646_s5 + $0x40] sm:$0xff] %v405_v21  ;;  %v408_v34 = vmax.f32 %v376_v23, 0.0  ;;  %v278_v36 = vmul.f32 %v598_v0, %v239_v19  ;;  %v247_v5 = vld [vmem:[%s604_s23 + $0xc0] sm:$0xff]  ;;  %v248_v6 = vld [vmem:[%s604_s23 + $0xc8] sm:$0xff]  ;;  %v355_v11 = vld [vmem:[%s610_s26 + $0xb0] sm:$0xff] }
  0x21   : > { %438 = vst [vmem:[%s646_s5 + $0x48] sm:$0xff] %v406_v22  ;;  %v409_v35 = vmax.f32 %v377_v24, 0.0  ;;  %v279_v37 = vmul.f32 %v598_v0, %v240_v20  ;;  %439 = vst [vmem:[%s646_s5 + $0x50] sm:$0xff] %v407_v28  ;;  %v379_v40 = vadd.f32 %v347_v25, %v315_v30  ;;  %v280_v44 = vmul.f32 %v598_v0, %v241_v27  ;;  %v356_v12 = vld [vmem:[%s610_s26 + $0xb8] sm:$0xff]  ;;  %v249_v13 = vld [vmem:[%s604_s23 + $0xd0] sm:$0xff] }
  0x22   : > { %v410_v39 = vmax.f32 %v378_v29, 0.0  ;;  %v380_v41 = vadd.f32 %v348_v26, %v316_v31  ;;  %440 = vst [vmem:[%s646_s5 + $0x58] sm:$0xff] %v408_v34  ;;  %v317_v45 = vadd.f32 %v616_v2, %v278_v36  ;;  %v281_v48 = vmul.f32 %v598_v0, %v242_v32  ;;  %v250_v18 = vld [vmem:[%s604_s23 + $0xd8] sm:$0xff]  ;;  %v251_v19 = vld [vmem:[%s604_s23 + $0xe0] sm:$0xff]  ;;  %v252_v24 = vld [vmem:[%s604_s23 + $0xe8] sm:$0xff] }
  0x23   : > { %441 = vst [vmem:[%s646_s5 + $0x60] sm:$0xff] %v409_v35  ;;  %v318_v46 = vadd.f32 %v616_v2, %v279_v37  ;;  %v282_v49 = vmul.f32 %v598_v0, %v243_v33  ;;  %v411_v52 = vmax.f32 %v379_v40, 0.0  ;;  %v319_v54 = vadd.f32 %v616_v2, %v280_v44  ;;  %v357_v28 = vld [vmem:[%s610_s26 + $0xc0] sm:$0xff]  ;;  %v358_v29 = vld [vmem:[%s610_s26 + $0xc8] sm:$0xff]  ;;  %v359_v33 = vld [vmem:[%s610_s26 + $0xd0] sm:$0xff] }
  0x24   : > { %442 = vst [vmem:[%s646_s5 + $0x68] sm:$0xff] %v410_v39  ;;  %v412_v53 = vmax.f32 %v380_v41, 0.0  ;;  %v283_v57 = vmul.f32 %v598_v0, %v244_v38  ;;  %v381_v58 = vadd.f32 %v349_v42, %v317_v45  ;;  %v320_v60 = vadd.f32 %v616_v2, %v281_v48  ;;  %v253_v36 = vld [vmem:[%s604_s23 + $0xf0] sm:$0xff]  ;;  %v254_v37 = vld [vmem:[%s604_s23 + $0xf8] sm:$0xff]  ;;  %v361_v42 = vld [vmem:[%s610_s26 + $0xe0] sm:$0xff] }
  0x25   : > { %v382_v59 = vadd.f32 %v350_v43, %v318_v46  ;;  %v321_v61 = vadd.f32 %v616_v2, %v282_v49  ;;  %443 = vst [vmem:[%s646_s5 + $0x70] sm:$0xff] %v411_v52  ;;  %v383_v63 = vadd.f32 %v351_v47, %v319_v54  ;;  %v284_v3 = vmul.f32 %v598_v0, %v245_v50  ;;  %v360_v41 = vld [vmem:[%s610_s26 + $0xd8] sm:$0xff]  ;;  %v362_v48 = vld [vmem:[%s610_s26 + $0xe8] sm:$0xff] }
  0x26   : > { %444 = vst [vmem:[%s646_s5 + $0x78] sm:$0xff] %v412_v53  ;;  %v322_v1 = vadd.f32 %v616_v2, %v283_v57  ;;  %v285_v4 = vmul.f32 %v598_v0, %v246_v51  ;;  %v413_v7 = vmax.f32 %v381_v58, 0.0  ;;  %v384_v9 = vadd.f32 %v352_v55, %v320_v60  ;;  %v363_v57 = vld [vmem:[%s610_s26 + $0xf0] sm:$0xff]  ;;  %v364_v58 = vld [vmem:[%s610_s26 + $0xf8] sm:$0xff] }
  0x27   : > { %v414_v8 = vmax.f32 %v382_v59, 0.0  ;;  %v385_v10 = vadd.f32 %v353_v56, %v321_v61  ;;  %v415_v14 = vmax.f32 %v383_v63, 0.0  ;;  %v323_v16 = vadd.f32 %v616_v2, %v284_v3 }
  0x28   : > { %v386_v15 = vadd.f32 %v354_v62, %v322_v1  ;;  %v324_v17 = vadd.f32 %v616_v2, %v285_v4  ;;  %445 = vst [vmem:[%s646_s5 + $0x80] sm:$0xff] %v413_v7  ;;  %v416_v20 = vmax.f32 %v384_v9, 0.0  ;;  %v286_v22 = vmul.f32 %v598_v0, %v247_v5 }
  0x29   : > { %446 = vst [vmem:[%s646_s5 + $0x88] sm:$0xff] %v414_v8  ;;  %v417_v21 = vmax.f32 %v385_v10, 0.0  ;;  %v287_v23 = vmul.f32 %v598_v0, %v248_v6  ;;  %447 = vst [vmem:[%s646_s5 + $0x90] sm:$0xff] %v415_v14  ;;  %v387_v26 = vadd.f32 %v355_v11, %v323_v16  ;;  %v288_v30 = vmul.f32 %v598_v0, %v249_v13 }
  0x2a   : > { %v418_v25 = vmax.f32 %v386_v15, 0.0  ;;  %v388_v27 = vadd.f32 %v356_v12, %v324_v17  ;;  %448 = vst [vmem:[%s646_s5 + $0x98] sm:$0xff] %v416_v20  ;;  %v325_v31 = vadd.f32 %v616_v2, %v286_v22  ;;  %v289_v34 = vmul.f32 %v598_v0, %v250_v18 }
  0x2b   : > { %449 = vst [vmem:[%s646_s5 + $0xa0] sm:$0xff] %v417_v21  ;;  %v326_v32 = vadd.f32 %v616_v2, %v287_v23  ;;  %v290_v35 = vmul.f32 %v598_v0, %v251_v19  ;;  %v419_v38 = vmax.f32 %v387_v26, 0.0  ;;  %v327_v40 = vadd.f32 %v616_v2, %v288_v30 }
  0x2c   : > { %450 = vst [vmem:[%s646_s5 + $0xa8] sm:$0xff] %v418_v25  ;;  %v420_v39 = vmax.f32 %v388_v27, 0.0  ;;  %v291_v43 = vmul.f32 %v598_v0, %v252_v24  ;;  %v389_v44 = vadd.f32 %v357_v28, %v325_v31  ;;  %v328_v46 = vadd.f32 %v616_v2, %v289_v34 }
  0x2d   : > { %v390_v45 = vadd.f32 %v358_v29, %v326_v32  ;;  %v329_v47 = vadd.f32 %v616_v2, %v290_v35  ;;  %451 = vst [vmem:[%s646_s5 + $0xb0] sm:$0xff] %v419_v38  ;;  %v391_v49 = vadd.f32 %v359_v33, %v327_v40  ;;  %v292_v51 = vmul.f32 %v598_v0, %v253_v36 }
  0x2e   : > { %452 = vst [vmem:[%s646_s5 + $0xb8] sm:$0xff] %v420_v39  ;;  %v330_v50 = vadd.f32 %v616_v2, %v291_v43  ;;  %v293_v52 = vmul.f32 %v598_v0, %v254_v37  ;;  %v421_v53 = vmax.f32 %v389_v44, 0.0  ;;  %v392_v55 = vadd.f32 %v360_v41, %v328_v46 }
  0x2f   : > { %v422_v54 = vmax.f32 %v390_v45, 0.0  ;;  %v393_v56 = vadd.f32 %v361_v42, %v329_v47  ;;  %v423_v59 = vmax.f32 %v391_v49, 0.0  ;;  %v331_v61 = vadd.f32 %v616_v2, %v292_v51 }
  0x30   : > { %v394_v60 = vadd.f32 %v362_v48, %v330_v50  ;;  %v332_v62 = vadd.f32 %v616_v2, %v293_v52  ;;  %453 = vst [vmem:[%s646_s5 + $0xc0] sm:$0xff] %v421_v53  ;;  %v424_v0 = vmax.f32 %v392_v55, 0.0 }
  0x31   : > { %454 = vst [vmem:[%s646_s5 + $0xc8] sm:$0xff] %v422_v54  ;;  %v425_v63 = vmax.f32 %v393_v56, 0.0  ;;  %455 = vst [vmem:[%s646_s5 + $0xd0] sm:$0xff] %v423_v59  ;;  %v395_v3 = vadd.f32 %v363_v57, %v331_v61 }
  0x32   : > { %v426_v1 = vmax.f32 %v394_v60, 0.0  ;;  %v396_v4 = vadd.f32 %v364_v58, %v332_v62  ;;  %456 = vst [vmem:[%s646_s5 + $0xd8] sm:$0xff] %v424_v0 }
  0x33   : > { %457 = vst [vmem:[%s646_s5 + $0xe0] sm:$0xff] %v425_v63  ;;  %v427_v5 = vmax.f32 %v395_v3, 0.0 }
  0x34   : > { %458 = vst [vmem:[%s646_s5 + $0xe8] sm:$0xff] %v426_v1  ;;  %v428_v6 = vmax.f32 %v396_v4, 0.0 }
  0x35   : > { %459 = vst [vmem:[%s646_s5 + $0xf0] sm:$0xff] %v427_v5 }
  0x36   : > { %460 = vst [vmem:[%s646_s5 + $0xf8] sm:$0xff] %v428_v6 }
  0x37 PF: > { %s14_s15 = sadd.s32 1, %s558_s15  }
  0x38   : > { %p11_p4 = scmp.ge.s32.totalorder %s14_s15, 4  }
  0x3a   :  { %13 = sbr.rel (!%p11_p4) target bundleno = 1 (0x1), region = 69 }

</bundles_post_ra>
